<compile_context>
chip_gen: v6e
topology: v6e:2x2x1
jax: 0.10.0
libtpu: 0.0.40
codegen_flags: <defaults>
</compile_context>

<pallas_src>
import math

import numpy as np
import jax
import jax.numpy as jnp
from jax.experimental import pallas as pl
from jax.experimental.pallas import tpu as pltpu


def _round_up(x, m):
    return (x + m - 1) // m * m


def _make_gcc_kernel(Bt, N, Fp, transform):
    BtN = Bt * N
    BtNN = Bt * N * N

    def kernel(x_ref, cre_ref, cim_ref, wre_ref, wim_ref, o_ref):
        # ---- forward real DFT: two MXU matmuls produce Re/Im directly (no slices) ----
        x = x_ref[...]                                                       # (Bt*N, Kp)
        xre = jnp.dot(x, cre_ref[...], preferred_element_type=jnp.float32)   # (Bt*N, Fp) f32
        xim = jnp.dot(x, cim_ref[...], preferred_element_type=jnp.float32)

        if transform == 'PHAT':
            # 1/|X| via EUP rsqrt; eps inside the sqrt keeps padded zero bins finite.
            inv = jax.lax.rsqrt(xre * xre + xim * xim + 1e-24)
            xre = xre * inv
            xim = xim * inv

        # ---- all N*N pairwise X_n * conj(X_m), rows ordered b*N*N + n*N + m ----
        # (row-expanded 2-D operands feeding the MXU; the small N-sublane broadcast
        #  is negligible next to the Fp*Lp matmul per row)
        a_re = jnp.broadcast_to(xre[:, None, :], (BtN, N, Fp)).reshape(BtNN, Fp)
        a_im = jnp.broadcast_to(xim[:, None, :], (BtN, N, Fp)).reshape(BtNN, Fp)
        b_re = jnp.broadcast_to(xre.reshape(Bt, 1, N, Fp), (Bt, N, N, Fp)).reshape(BtNN, Fp)
        b_im = jnp.broadcast_to(xim.reshape(Bt, 1, N, Fp), (Bt, N, N, Fp)).reshape(BtNN, Fp)
        mdt = wre_ref.dtype
        r_re = (a_re * b_re + a_im * b_im).astype(mdt)   # Re(X_n * conj(X_m))
        r_im = (a_im * b_re - a_re * b_im).astype(mdt)   # Im(X_n * conj(X_m))

        # ---- inverse real DFT at the selected lags: two MXU matmuls + add ----
        g = (jnp.dot(r_re, wre_ref[...], preferred_element_type=jnp.float32)
             + jnp.dot(r_im, wim_ref[...], preferred_element_type=jnp.float32))
        o_ref[...] = g                                                       # (Bt*N*N, Lp)

    return kernel


def gcc_pallas(x, K, N, tau_max=None, transform=None, use_bf16=True, batch_tile=None):
    """Pallas GCC / GCC-PHAT. x: (B, N, K) float. Returns (B, N, N, 2*tau_max+1)."""
    assert transform is None or transform == 'PHAT'
    tau_max = tau_max if tau_max is not None else K // 2
    assert tau_max <= K // 2
    B = x.shape[0]
    assert x.shape[1] == N and x.shape[2] == K

    F = K // 2 + 1
    L = 2 * tau_max + 1
    Kp = _round_up(K, 128)          # lane-pad time axis (aligned contraction dim)
    Fp = _round_up(F, 128)          # lane-pad frequency axis
    Lp = _round_up(L, 128)          # lane-pad lag axis (dense output stores)

    # ---- glue (numpy): real-DFT and selected-lag inverse-DFT coefficient matrices ----
    kk = np.arange(K)[:, None].astype(np.float64)
    ff = np.arange(F)[None, :].astype(np.float64)
    ang = 2.0 * np.pi * kk * ff / K                               # (K, F)
    Cre = np.zeros((Kp, Fp), np.float64); Cre[:K, :F] = np.cos(ang)     # Re X = x @ Cre
    Cim = np.zeros((Kp, Fp), np.float64); Cim[:K, :F] = -np.sin(ang)    # Im X = x @ Cim

    lags = np.concatenate([np.arange(tau_max + 1), np.arange(K - tau_max, K)])   # (L,)
    wgt = np.full(F, 2.0)
    wgt[0] = 1.0
    if K % 2 == 0:
        wgt[-1] = 1.0                                             # Nyquist bin counted once
    ang2 = 2.0 * np.pi * np.arange(F)[:, None] * lags[None, :] / K      # (F, L)
    Wre = np.zeros((Fp, Lp), np.float64); Wre[:F, :L] = (wgt[:, None] / K) * np.cos(ang2)
    Wim = np.zeros((Fp, Lp), np.float64); Wim[:F, :L] = -(wgt[:, None] / K) * np.sin(ang2)

    # bf16 MXU operands by default (accumulation stays f32 via preferred_element_type).
    mat_dtype = jnp.bfloat16 if use_bf16 else jnp.float32
    esz = 2 if use_bf16 else 4
    Cre_d = jnp.asarray(Cre, mat_dtype); Cim_d = jnp.asarray(Cim, mat_dtype)
    Wre_d = jnp.asarray(Wre, mat_dtype); Wim_d = jnp.asarray(Wim, mat_dtype)

    # ---- VMEM-aware batch tile (batches folded into the matmul M dimension) ----
    # q: smallest batch multiple keeping every block's sublane dim a multiple of 8.
    q = 8 // math.gcd(8, N)
    try:
        vmem_cap = int(pltpu.get_tpu_info().vmem_capacity_bytes)
    except Exception:
        vmem_cap = 64 << 20          # conservative fallback (v7x per-TensorCore VMEM)

    def vmem_est(bt):
        m, p = bt * N, bt * N * N
        return (2 * m * Kp * esz                      # x block, double-buffered
                + 2 * 2 * (Kp * Fp + Fp * Lp) * esz   # C/W blocks (counted double-buffered)
                + 2 * p * Lp * 4                      # output block, double-buffered
                + 2 * m * Fp * 4                      # xre / xim (f32)
                + 6 * p * Fp * 4                      # pairwise broadcasts + r_re / r_im
                + 2 * p * Fp * esz                    # r cast to MXU dtype
                + p * Lp * 4)                         # g before store

    budget = int(vmem_cap * 0.70)
    if batch_tile is not None:
        Bt = _round_up(max(1, int(batch_tile)), q)
    else:
        # biggest tile that fits the budget, but keep >= 2 grid steps when B allows
        # so the "parallel" batch axis can shard across TensorCores (v7x megacore).
        Bt = _round_up(max(1, pl.cdiv(B, 2)), q)
        while Bt > q and vmem_est(Bt) > budget:
            Bt = _round_up(max(q, Bt // 2), q)
    Bpad = pl.cdiv(B, Bt) * Bt

    vmem_limit = int(min(int(vmem_cap * 0.90),
                         max(int(vmem_est(Bt) * 1.4) + (4 << 20), 32 << 20)))

    # ---- wrapper-side layout: (B, N, K) -> (Bpad*N, Kp); output is (Bpad*N*N, Lp) ----
    xin = jnp.pad(x.astype(mat_dtype), ((0, Bpad - B), (0, 0), (0, Kp - K)))
    xin = xin.reshape(Bpad * N, Kp)

    kernel = _make_gcc_kernel(Bt, N, Fp, transform)

    def build(single_buffer_weights):
        if single_buffer_weights:
            def wspec(shape):
                return pl.BlockSpec(shape, lambda b: (0, 0), pipeline_mode=pl.Buffered(1))
        else:
            def wspec(shape):
                return pl.BlockSpec(shape, lambda b: (0, 0))
        return pl.pallas_call(
            kernel,
            out_shape=jax.ShapeDtypeStruct((Bpad * N * N, Lp), jnp.float32),
            grid_spec=pltpu.PrefetchScalarGridSpec(
                num_scalar_prefetch=0,
                grid=(Bpad // Bt,),
                in_specs=[
                    pl.BlockSpec((Bt * N, Kp), lambda b: (b, 0)),
                    wspec((Kp, Fp)), wspec((Kp, Fp)),       # C_re, C_im (grid-invariant)
                    wspec((Fp, Lp)), wspec((Fp, Lp)),       # W_re, W_im (grid-invariant)
                ],
                out_specs=pl.BlockSpec((Bt * N * N, Lp), lambda b: (b, 0)),
            ),
            compiler_params=pltpu.CompilerParams(
                dimension_semantics=("parallel",),
                vmem_limit_bytes=vmem_limit),
        )

    try:
        out = jax.block_until_ready(build(True)(xin, Cre_d, Cim_d, Wre_d, Wim_d))
    except Exception:
        # TODO(synk): pl.Buffered(1) single-buffering of the grid-invariant C/W blocks is
        # not supported on this jax version; fall back to default double-buffering.
        out = jax.block_until_ready(build(False)(xin, Cre_d, Cim_d, Wre_d, Wim_d))

    # strip batch padding and lag-lane padding; restore (B, N, N, L) layout
    return out.reshape(Bpad, N, N, Lp)[:B, :, :, :L]


def gcc_ref(x, K, N, tau_max=None, transform=None):
    """Pure-JAX reference mirroring the PyTorch module."""
    tau_max = tau_max if tau_max is not None else K // 2
    Xf = jnp.fft.rfft(x, axis=-1)                              # (B, N, F) complex
    if transform == 'PHAT':
        Xf = Xf / (jnp.abs(Xf) + 1e-12)
    R = Xf[..., :, None, :] * jnp.conj(Xf[..., None, :, :])    # (B, N, N, F)
    g = jnp.fft.irfft(R, n=K, axis=-1)                         # (B, N, N, K)
    return jnp.concatenate([g[..., :tau_max + 1], g[..., K - tau_max:]], axis=-1)


if __name__ == "__main__":
    B, N, K = 3, 4, 16
    key = jax.random.PRNGKey(0)
    x = jax.random.normal(key, (B, N, K), dtype=jnp.float32)

    ref = np.asarray(gcc_ref(x, K, N, None, None))
    ref_phat = np.asarray(gcc_ref(x, K, N, 4, 'PHAT'))

    # f32 path: tight tolerance against the FFT reference
    out_f32 = jax.block_until_ready(gcc_pallas(x, K, N, use_bf16=False))
    np.testing.assert_allclose(np.asarray(out_f32), ref, rtol=1e-3, atol=1e-3)

    # f32 GCC-PHAT path (explicit batch tile exercises a 2-step grid + batch padding)
    out_phat_f32 = jax.block_until_ready(
        gcc_pallas(x, K, N, tau_max=4, transform='PHAT', use_bf16=False, batch_tile=2))
    np.testing.assert_allclose(np.asarray(out_phat_f32), ref_phat, rtol=1e-3, atol=1e-3)

    # default bf16 MXU path (f32 accumulation): scale-aware loose tolerance
    out_bf16 = jax.block_until_ready(gcc_pallas(x, K, N))
    scale = float(np.max(np.abs(ref)))
    np.testing.assert_allclose(np.asarray(out_bf16), ref, rtol=1e-1, atol=1e-1 * scale)

    out_phat = jax.block_until_ready(
        gcc_pallas(x, K, N, tau_max=4, transform='PHAT', batch_tile=2))
    scale_p = float(np.max(np.abs(ref_phat)))
    np.testing.assert_allclose(np.asarray(out_phat), ref_phat, rtol=1e-1, atol=1e-1 * scale_p)

    assert out_f32.shape == (B, N, N, 2 * (K // 2) + 1)
    assert out_phat.shape == (B, N, N, 2 * 4 + 1)
    print("KERNEL_OK")
</pallas_src>

<mosaic_0001>
module attributes {stable_mosaic.version = 11 : i64} {
  func.func @kernel(%arg0: i32, %arg1: memref<8x128xf32, #tpu.memory_space<vmem>>, %arg2: memref<128x128xf32, #tpu.memory_space<vmem>>, %arg3: memref<128x128xf32, #tpu.memory_space<vmem>>, %arg4: memref<128x128xf32, #tpu.memory_space<vmem>>, %arg5: memref<128x128xf32, #tpu.memory_space<vmem>>, %arg6: memref<32x128xf32, #tpu.memory_space<vmem>>) attributes {dimension_semantics = [#tpu.dimension_semantics<parallel>], iteration_bounds = array<i64: 2>, scalar_prefetch = 0 : i64, scratch_operands = 0 : i64, tpu.core_type = #tpu.core_type<tc>, window_params = [{transform_indices = @transform_0, window_bounds = array<i64: 8, 128>}, {pipeline_mode = #tpu.pipeline_mode<synchronous>, transform_indices = @transform_1, window_bounds = array<i64: 128, 128>}, {pipeline_mode = #tpu.pipeline_mode<synchronous>, transform_indices = @transform_2, window_bounds = array<i64: 128, 128>}, {pipeline_mode = #tpu.pipeline_mode<synchronous>, transform_indices = @transform_3, window_bounds = array<i64: 128, 128>}, {pipeline_mode = #tpu.pipeline_mode<synchronous>, transform_indices = @transform_4, window_bounds = array<i64: 128, 128>}, {transform_indices = @transform_5, window_bounds = array<i64: 32, 128>}]} {
    %c0 = arith.constant 0 : index
    %c0_0 = arith.constant 0 : index
    %0 = vector.load %arg1[%c0, %c0_0] : memref<8x128xf32, #tpu.memory_space<vmem>>, vector<8x128xf32>
    %c0_1 = arith.constant 0 : index
    %c0_2 = arith.constant 0 : index
    %1 = vector.load %arg2[%c0_1, %c0_2] : memref<128x128xf32, #tpu.memory_space<vmem>>, vector<128x128xf32>
    %cst = arith.constant dense<0.000000e+00> : vector<8x128xf32>
    %2 = tpu.matmul %0, %1, %cst {dimension_numbers = #tpu.dot_dimension_numbers<[1], [0], [0], [1], [0, 0, 1, 1], [], []>} : vector<8x128xf32>, vector<128x128xf32>, vector<8x128xf32> -> vector<8x128xf32>
    %c0_3 = arith.constant 0 : index
    %c0_4 = arith.constant 0 : index
    %3 = vector.load %arg3[%c0_3, %c0_4] : memref<128x128xf32, #tpu.memory_space<vmem>>, vector<128x128xf32>
    %cst_5 = arith.constant dense<0.000000e+00> : vector<8x128xf32>
    %4 = tpu.matmul %0, %3, %cst_5 {dimension_numbers = #tpu.dot_dimension_numbers<[1], [0], [0], [1], [0, 0, 1, 1], [], []>} : vector<8x128xf32>, vector<128x128xf32>, vector<8x128xf32> -> vector<8x128xf32>
    %5 = vector.shape_cast %2 : vector<8x128xf32> to vector<8x1x128xf32>
    %6 = vector.shape_cast %5 : vector<8x1x128xf32> to vector<8x1x128xf32>
    %7 = vector.broadcast %6 : vector<8x1x128xf32> to vector<8x4x128xf32>
    %8 = vector.shape_cast %7 : vector<8x4x128xf32> to vector<32x128xf32>
    %9 = vector.shape_cast %4 : vector<8x128xf32> to vector<8x1x128xf32>
    %10 = vector.shape_cast %9 : vector<8x1x128xf32> to vector<8x1x128xf32>
    %11 = vector.broadcast %10 : vector<8x1x128xf32> to vector<8x4x128xf32>
    %12 = vector.shape_cast %11 : vector<8x4x128xf32> to vector<32x128xf32>
    %13 = vector.shape_cast %2 : vector<8x128xf32> to vector<2x1x4x128xf32>
    %14 = vector.shape_cast %13 : vector<2x1x4x128xf32> to vector<2x1x4x128xf32>
    %15 = vector.broadcast %14 : vector<2x1x4x128xf32> to vector<2x4x4x128xf32>
    %16 = vector.shape_cast %15 : vector<2x4x4x128xf32> to vector<32x128xf32>
    %17 = vector.shape_cast %4 : vector<8x128xf32> to vector<2x1x4x128xf32>
    %18 = vector.shape_cast %17 : vector<2x1x4x128xf32> to vector<2x1x4x128xf32>
    %19 = vector.broadcast %18 : vector<2x1x4x128xf32> to vector<2x4x4x128xf32>
    %20 = vector.shape_cast %19 : vector<2x4x4x128xf32> to vector<32x128xf32>
    %21 = arith.mulf %8, %16 : vector<32x128xf32>
    %22 = arith.mulf %12, %20 : vector<32x128xf32>
    %23 = arith.addf %21, %22 : vector<32x128xf32>
    %24 = arith.mulf %12, %16 : vector<32x128xf32>
    %25 = arith.mulf %8, %20 : vector<32x128xf32>
    %26 = arith.subf %24, %25 : vector<32x128xf32>
    %c0_6 = arith.constant 0 : index
    %c0_7 = arith.constant 0 : index
    %27 = vector.load %arg4[%c0_6, %c0_7] : memref<128x128xf32, #tpu.memory_space<vmem>>, vector<128x128xf32>
    %cst_8 = arith.constant dense<0.000000e+00> : vector<32x128xf32>
    %28 = tpu.matmul %23, %27, %cst_8 {dimension_numbers = #tpu.dot_dimension_numbers<[1], [0], [0], [1], [0, 0, 1, 1], [], []>} : vector<32x128xf32>, vector<128x128xf32>, vector<32x128xf32> -> vector<32x128xf32>
    %c0_9 = arith.constant 0 : index
    %c0_10 = arith.constant 0 : index
    %29 = vector.load %arg5[%c0_9, %c0_10] : memref<128x128xf32, #tpu.memory_space<vmem>>, vector<128x128xf32>
    %cst_11 = arith.constant dense<0.000000e+00> : vector<32x128xf32>
    %30 = tpu.matmul %26, %29, %cst_11 {dimension_numbers = #tpu.dot_dimension_numbers<[1], [0], [0], [1], [0, 0, 1, 1], [], []>} : vector<32x128xf32>, vector<128x128xf32>, vector<32x128xf32> -> vector<32x128xf32>
    %31 = arith.addf %28, %30 : vector<32x128xf32>
    %c0_12 = arith.constant 0 : index
    %c0_13 = arith.constant 0 : index
    %32 = vector.load %arg6[%c0_12, %c0_13] : memref<32x128xf32, #tpu.memory_space<vmem>>, vector<32x128xf32>
    tpu.vector_store %arg6[%c0_12, %c0_13], %31 {strides = array<i32>} : memref<32x128xf32, #tpu.memory_space<vmem>>, vector<32x128xf32>,
    return
  }
  func.func @transform_0(%arg0: i32) -> (i32, i32) {
    %c0_i32 = arith.constant 0 : i32
    %c0_i32_0 = arith.constant 0 : i32
    return %arg0, %c0_i32 : i32, i32
  }
  func.func @transform_1(%arg0: i32) -> (i32, i32) {
    %c0_i32 = arith.constant 0 : i32
    %c0_i32_0 = arith.constant 0 : i32
    %c0_i32_1 = arith.constant 0 : i32
    return %c0_i32, %c0_i32_0 : i32, i32
  }
  func.func @transform_2(%arg0: i32) -> (i32, i32) {
    %c0_i32 = arith.constant 0 : i32
    %c0_i32_0 = arith.constant 0 : i32
    %c0_i32_1 = arith.constant 0 : i32
    return %c0_i32, %c0_i32_0 : i32, i32
  }
  func.func @transform_3(%arg0: i32) -> (i32, i32) {
    %c0_i32 = arith.constant 0 : i32
    %c0_i32_0 = arith.constant 0 : i32
    %c0_i32_1 = arith.constant 0 : i32
    return %c0_i32, %c0_i32_0 : i32, i32
  }
  func.func @transform_4(%arg0: i32) -> (i32, i32) {
    %c0_i32 = arith.constant 0 : i32
    %c0_i32_0 = arith.constant 0 : i32
    %c0_i32_1 = arith.constant 0 : i32
    return %c0_i32, %c0_i32_0 : i32, i32
  }
  func.func @transform_5(%arg0: i32) -> (i32, i32) {
    %c0_i32 = arith.constant 0 : i32
    %c0_i32_0 = arith.constant 0 : i32
    return %arg0, %c0_i32 : i32, i32
  }
}

module attributes {stable_mosaic.version = 11 : i64} {
  func.func @kernel(%arg0: i32, %arg1: memref<8x128xf32, #tpu.memory_space<vmem>>, %arg2: memref<128x128xf32, #tpu.memory_space<vmem>>, %arg3: memref<128x128xf32, #tpu.memory_space<vmem>>, %arg4: memref<128x128xf32, #tpu.memory_space<vmem>>, %arg5: memref<128x128xf32, #tpu.memory_space<vmem>>, %arg6: memref<32x128xf32, #tpu.memory_space<vmem>>) attributes {dimension_semantics = [#tpu.dimension_semantics<parallel>], iteration_bounds = array<i64: 2>, scalar_prefetch = 0 : i64, scratch_operands = 0 : i64, tpu.core_type = #tpu.core_type<tc>, window_params = [{transform_indices = @transform_0, window_bounds = array<i64: 8, 128>}, {pipeline_mode = #tpu.pipeline_mode<synchronous>, transform_indices = @transform_1, window_bounds = array<i64: 128, 128>}, {pipeline_mode = #tpu.pipeline_mode<synchronous>, transform_indices = @transform_2, window_bounds = array<i64: 128, 128>}, {pipeline_mode = #tpu.pipeline_mode<synchronous>, transform_indices = @transform_3, window_bounds = array<i64: 128, 128>}, {pipeline_mode = #tpu.pipeline_mode<synchronous>, transform_indices = @transform_4, window_bounds = array<i64: 128, 128>}, {transform_indices = @transform_5, window_bounds = array<i64: 32, 128>}]} {
    %c0 = arith.constant 0 : index
    %c0_0 = arith.constant 0 : index
    %0 = vector.load %arg1[%c0, %c0_0] : memref<8x128xf32, #tpu.memory_space<vmem>>, vector<8x128xf32>
    %c0_1 = arith.constant 0 : index
    %c0_2 = arith.constant 0 : index
    %1 = vector.load %arg2[%c0_1, %c0_2] : memref<128x128xf32, #tpu.memory_space<vmem>>, vector<128x128xf32>
    %cst = arith.constant dense<0.000000e+00> : vector<8x128xf32>
    %2 = tpu.matmul %0, %1, %cst {dimension_numbers = #tpu.dot_dimension_numbers<[1], [0], [0], [1], [0, 0, 1, 1], [], []>} : vector<8x128xf32>, vector<128x128xf32>, vector<8x128xf32> -> vector<8x128xf32>
    %c0_3 = arith.constant 0 : index
    %c0_4 = arith.constant 0 : index
    %3 = vector.load %arg3[%c0_3, %c0_4] : memref<128x128xf32, #tpu.memory_space<vmem>>, vector<128x128xf32>
    %cst_5 = arith.constant dense<0.000000e+00> : vector<8x128xf32>
    %4 = tpu.matmul %0, %3, %cst_5 {dimension_numbers = #tpu.dot_dimension_numbers<[1], [0], [0], [1], [0, 0, 1, 1], [], []>} : vector<8x128xf32>, vector<128x128xf32>, vector<8x128xf32> -> vector<8x128xf32>
    %5 = vector.shape_cast %2 : vector<8x128xf32> to vector<8x1x128xf32>
    %6 = vector.shape_cast %5 : vector<8x1x128xf32> to vector<8x1x128xf32>
    %7 = vector.broadcast %6 : vector<8x1x128xf32> to vector<8x4x128xf32>
    %8 = vector.shape_cast %7 : vector<8x4x128xf32> to vector<32x128xf32>
    %9 = vector.shape_cast %4 : vector<8x128xf32> to vector<8x1x128xf32>
    %10 = vector.shape_cast %9 : vector<8x1x128xf32> to vector<8x1x128xf32>
    %11 = vector.broadcast %10 : vector<8x1x128xf32> to vector<8x4x128xf32>
    %12 = vector.shape_cast %11 : vector<8x4x128xf32> to vector<32x128xf32>
    %13 = vector.shape_cast %2 : vector<8x128xf32> to vector<2x1x4x128xf32>
    %14 = vector.shape_cast %13 : vector<2x1x4x128xf32> to vector<2x1x4x128xf32>
    %15 = vector.broadcast %14 : vector<2x1x4x128xf32> to vector<2x4x4x128xf32>
    %16 = vector.shape_cast %15 : vector<2x4x4x128xf32> to vector<32x128xf32>
    %17 = vector.shape_cast %4 : vector<8x128xf32> to vector<2x1x4x128xf32>
    %18 = vector.shape_cast %17 : vector<2x1x4x128xf32> to vector<2x1x4x128xf32>
    %19 = vector.broadcast %18 : vector<2x1x4x128xf32> to vector<2x4x4x128xf32>
    %20 = vector.shape_cast %19 : vector<2x4x4x128xf32> to vector<32x128xf32>
    %21 = arith.mulf %8, %16 : vector<32x128xf32>
    %22 = arith.mulf %12, %20 : vector<32x128xf32>
    %23 = arith.addf %21, %22 : vector<32x128xf32>
    %24 = arith.mulf %12, %16 : vector<32x128xf32>
    %25 = arith.mulf %8, %20 : vector<32x128xf32>
    %26 = arith.subf %24, %25 : vector<32x128xf32>
    %c0_6 = arith.constant 0 : index
    %c0_7 = arith.constant 0 : index
    %27 = vector.load %arg4[%c0_6, %c0_7] : memref<128x128xf32, #tpu.memory_space<vmem>>, vector<128x128xf32>
    %cst_8 = arith.constant dense<0.000000e+00> : vector<32x128xf32>
    %28 = tpu.matmul %23, %27, %cst_8 {dimension_numbers = #tpu.dot_dimension_numbers<[1], [0], [0], [1], [0, 0, 1, 1], [], []>} : vector<32x128xf32>, vector<128x128xf32>, vector<32x128xf32> -> vector<32x128xf32>
    %c0_9 = arith.constant 0 : index
    %c0_10 = arith.constant 0 : index
    %29 = vector.load %arg5[%c0_9, %c0_10] : memref<128x128xf32, #tpu.memory_space<vmem>>, vector<128x128xf32>
    %cst_11 = arith.constant dense<0.000000e+00> : vector<32x128xf32>
    %30 = tpu.matmul %26, %29, %cst_11 {dimension_numbers = #tpu.dot_dimension_numbers<[1], [0], [0], [1], [0, 0, 1, 1], [], []>} : vector<32x128xf32>, vector<128x128xf32>, vector<32x128xf32> -> vector<32x128xf32>
    %31 = arith.addf %28, %30 : vector<32x128xf32>
    %c0_12 = arith.constant 0 : index
    %c0_13 = arith.constant 0 : index
    %32 = vector.load %arg6[%c0_12, %c0_13] : memref<32x128xf32, #tpu.memory_space<vmem>>, vector<32x128xf32>
    tpu.vector_store %arg6[%c0_12, %c0_13], %31 {strides = array<i32>} : memref<32x128xf32, #tpu.memory_space<vmem>>, vector<32x128xf32>,
    return
  }
  func.func @transform_0(%arg0: i32) -> (i32, i32) {
    %c0_i32 = arith.constant 0 : i32
    %c0_i32_0 = arith.constant 0 : i32
    return %arg0, %c0_i32 : i32, i32
  }
  func.func @transform_1(%arg0: i32) -> (i32, i32) {
    %c0_i32 = arith.constant 0 : i32
    %c0_i32_0 = arith.constant 0 : i32
    %c0_i32_1 = arith.constant 0 : i32
    return %c0_i32, %c0_i32_0 : i32, i32
  }
  func.func @transform_2(%arg0: i32) -> (i32, i32) {
    %c0_i32 = arith.constant 0 : i32
    %c0_i32_0 = arith.constant 0 : i32
    %c0_i32_1 = arith.constant 0 : i32
    return %c0_i32, %c0_i32_0 : i32, i32
  }
  func.func @transform_3(%arg0: i32) -> (i32, i32) {
    %c0_i32 = arith.constant 0 : i32
    %c0_i32_0 = arith.constant 0 : i32
    %c0_i32_1 = arith.constant 0 : i32
    return %c0_i32, %c0_i32_0 : i32, i32
  }
  func.func @transform_4(%arg0: i32) -> (i32, i32) {
    %c0_i32 = arith.constant 0 : i32
    %c0_i32_0 = arith.constant 0 : i32
    %c0_i32_1 = arith.constant 0 : i32
    return %c0_i32, %c0_i32_0 : i32, i32
  }
  func.func @transform_5(%arg0: i32) -> (i32, i32) {
    %c0_i32 = arith.constant 0 : i32
    %c0_i32_0 = arith.constant 0 : i32
    return %arg0, %c0_i32 : i32, i32
  }
}

</mosaic_0001>

<bundles_post_ra>
// kernel: tpu_custom_call.1
= control target key start
LH: loop header
LB: loop body
LE: loop exit
PB: predicated region body
PF: predicated region fallthrough
CT: control target
= control target key end

     0   :  { %10 = vsyncpa [#allocation3], 0  ;;  %s1971_s0 = inlined_call_operand.hbm [shape: f32[16,128], index: 0, kind: input, shape index: {}]   ;;  %s1972_s1 = inlined_call_operand.hbm [shape: f32[128,128], index: 1, kind: input, shape index: {}]   ;;  %s1973_s2 = inlined_call_operand.hbm [shape: f32[128,128], index: 2, kind: input, shape index: {}]   ;;  %s1974_s3 = inlined_call_operand.hbm [shape: f32[128,128], index: 3, kind: input, shape index: {}]   ;;  %s1975_s4 = inlined_call_operand.hbm [shape: f32[128,128], index: 4, kind: input, shape index: {}]   ;;  %s1976_s5 = inlined_call_operand.hbm [shape: f32[64,128], index: 5, kind: output, shape index: {}]  }
   0x1   :  { %12 = vsyncpa [#allocation3 + $0x1], 0 }
   0x2   :  { %13 = vsyncpa [#allocation6], 0 }
   0x3   :  { %14 = vsyncpa [#allocation9], 0 }
   0x4   :  { %15 = vsyncpa [#allocation4], 0 }
   0x5   :  { %17 = vsyncpa [#allocation4 + $0x1], 0  ;;  %s1650_s18 = smov 0   ;;  %s1652_s19 = smov 0  }
   0x6   :  { %s1654_s20 = smov 0   ;;  %s1656_s21 = smov 0  }
   0x7 LB: > { %s1607_s22 = smov [#allocation5]   ;;  %s1671_s24 = sadd.s32 4294967295, %s1605_s21   ;;  %s1605_s21 = sphi %s1656_s21, %s2000_s21   ;;  %s1601_s20 = sphi %s1654_s20, %s1999_s20   ;;  %s1597_s19 = sphi %s1652_s19, %s1998_s19   ;;  %s1593_s18 = sphi %s1650_s18, %s1997_s18  }
   0x8   : > { %s176_s23 = sshll.u32 %s1607_s22, 4  ;;  %p1066_p0 = scmp.ge.s32.totalorder %s1605_s21, 1  ;;  %s177_s23 = int_to_ptr.vmem [resolvable:$true] %s176_s23 }
   0x9   : > { %p1977_p1 = scmp.eq.s32.totalorder %s1671_s24, 0  ;;  %p164_p2 = scmp.lt.s32.totalorder %s1605_s21, 3 }
   0xa   : > { %s1608_s26 = smov [#allocation8]   ;;  %s1609_s29 = smov [#allocation7]  }
   0xb   : > { %p1676_p3 = pnand %p1066_p0, %p164_p2  ;;  %s202_s27 = sshll.u32 %s1608_s26, 4  ;;  %s1689_s27 = int_to_ptr.vmem [resolvable:$true] %s202_s27 }
   0xc   : > { %s189_s30 = sshll.u32 %s1609_s29, 4  ;;  %s1412_s6 = scalar_lea.vmem %s177_s23, 2048  ;;  %s1691_s30 = int_to_ptr.vmem [resolvable:$true] %s189_s30 }
   0xd   : > { %s1981_s25 = scalar_select %p1676_p3, 1, 0 }
   0xe   : > { %p1327_p5 = pneg %p1676_p3  ;;  %p1413_p8 = scmp.ne.s32.totalorder %s177_s23, %s1412_s6 }
   0xf   : > { %p1420_p11 = scmp.lt.s32.totalorder %s177_s23, %s177_s23  ;;  %p1421_p12 = scmp.lt.s32.totalorder %s1412_s6, %s1412_s6 }
  0x10   : > { %p1685_p6 = pnand %p1327_p5, %p1977_p1 }
  0x11   : > { %p1422_p13 = por %p1421_p12, %p1420_p11 }
  0x12   : > { %p1403_p7 = pneg %p1685_p6 }
  0x14   : > { %p1415_p9 = pnand %p1413_p8, %p1403_p7 }
  0x16   : > { %p1416_p10 = pneg %p1415_p9 }
  0x18   : > { %p1423_p0 = pnand %p1422_p13, %p1416_p10 }
  0x1a   : > { %1426 = shalt.err (!%p1423_p0)
}
  0x1b   : > { %s1610_s7 = smov 128   ;;  %s1611_s8 = smov 8  }
  0x1c   : > { %1330 = dma.hbm_to_vmem [thread:$0]  (!%p1685_p6), %s1972_s1, 2048, %s177_s23, [#allocation6], %s1610_s7, %s1610_s7, %s1611_s8  }
  0x1d   : > { %s1438_s11 = scalar_lea.vmem %s1689_s27, 2048  ;;  %p1446_p9 = scmp.lt.s32.totalorder %s1689_s27, %s1689_s27 }
  0x1e   : > { %p1439_p2 = scmp.ne.s32.totalorder %s1689_s27, %s1438_s11  ;;  %p1447_p10 = scmp.lt.s32.totalorder %s1438_s11, %s1438_s11 }
  0x20   : > { %p1441_p5 = pnand %p1439_p2, %p1403_p7  ;;  %p1448_p11 = por %p1447_p10, %p1446_p9 }
  0x22   : > { %p1442_p8 = pneg %p1441_p5 }
  0x24   : > { %p1449_p12 = pnand %p1448_p11, %p1442_p8 }
  0x26   : > { %1452 = shalt.err (!%p1449_p12)
}
  0x27   : > { %1336 = dma.hbm_to_vmem [thread:$0]  (!%p1685_p6), %s1974_s3, 2048, %s1689_s27, [#allocation9], %s1610_s7, %s1610_s7, %s1611_s8  }
  0x28   : > { %s1464_s14 = scalar_lea.vmem %s1691_s30, 2048  ;;  %p1472_p5 = scmp.lt.s32.totalorder %s1691_s30, %s1691_s30 }
  0x29   : > { %p1465_p13 = scmp.ne.s32.totalorder %s1691_s30, %s1464_s14  ;;  %p1473_p8 = scmp.lt.s32.totalorder %s1464_s14, %s1464_s14 }
  0x2b   : > { %p1467_p0 = pnand %p1465_p13, %p1403_p7  ;;  %p1474_p9 = por %p1473_p8, %p1472_p5 }
  0x2d   : > { %p1468_p2 = pneg %p1467_p0 }
  0x2f   : > { %p1475_p10 = pnand %p1474_p9, %p1468_p2 }
  0x31   : > { %1478 = shalt.err (!%p1475_p10)
}
  0x32   : > { %1333 = dma.hbm_to_vmem [thread:$0]  (!%p1685_p6), %s1973_s2, 2048, %s1691_s30, [#allocation6], %s1610_s7, %s1610_s7, %s1611_s8  }
  0x33   : > { %s1612_s17 = smov [#allocation10]  }
  0x34   : > { %s215_s22 = sshll.u32 %s1612_s17, 4  ;;  %s216_s22 = int_to_ptr.vmem [resolvable:$true] %s215_s22 }
  0x35   : > { %s1490_s23 = scalar_lea.vmem %s216_s22, 2048  ;;  %p1498_p0 = scmp.lt.s32.totalorder %s216_s22, %s216_s22 }
  0x36   : > { %p1491_p11 = scmp.ne.s32.totalorder %s216_s22, %s1490_s23  ;;  %p1499_p2 = scmp.lt.s32.totalorder %s1490_s23, %s1490_s23 }
  0x38   : > { %p1493_p12 = pnand %p1491_p11, %p1403_p7  ;;  %p1500_p5 = por %p1499_p2, %p1498_p0 }
  0x3a   : > { %p1494_p13 = pneg %p1493_p12 }
  0x3c   : > { %p1501_p8 = pnand %p1500_p5, %p1494_p13 }
  0x3e   : > { %1504 = shalt.err (!%p1501_p8)
}
  0x3f   : > { %1339 = dma.hbm_to_vmem [thread:$0]  (!%p1685_p6), %s1975_s4, 2048, %s216_s22, [#allocation9], %s1610_s7, %s1610_s7, %s1611_s8  }
  0x40   : > { %s1065_s28 = sadd.s32 4294967294, %s1605_s21   ;;  %s1751_s29 = sadd.s32 1, %s1605_s21  }
  0x41   : > { %s27_s30 = ssub.s32 %s1605_s21, %s1751_s29  ;;  %s30_s6 = sadd.s32 1, %s1601_s20 }
  0x42   : > { %p28_p7 = scmp.eq.s32.totalorder %s27_s30, 0  ;;  %p37_p9 = scmp.ne.s32.totalorder %s1601_s20, %s1597_s19 }
  0x43   : > { %p38_p10 = scmp.eq.s32.totalorder %s1605_s21, 0  ;;  %p43_p11 = scmp.ne.s32.totalorder %s1597_s19, %s1593_s18 }
  0x44   : > { %s1762_s9 = scalar_select %p28_p7, %s1601_s20, %s30_s6  }
  0x45   : > { %p1764_p12 = por %p38_p10, %p37_p9  ;;  %p1770_p6 = por %p1977_p1, %p43_p11 }
  0x46   : > { %p151_p13 = scmp.eq.s32.totalorder %s1671_s24, 1  ;;  %p157_p0 = scmp.eq.s32.totalorder %s1065_s28, 1 }
  0x47   : > { %s1984_s7 = scalar_select %p1770_p6, 1, 0 }
  0x48   : > { %p1352_p2 = scmp.lt.s32.totalorder %s1605_s21, 2  ;;  %s229_s8 = sand.u32 1, %s1601_s20  }
  0x49   : > { %p1777_p5 = por %p151_p13, %p37_p9  ;;  %p1781_p8 = por %p157_p0, %p43_p11 }
  0x4a   : > { %s1072_s13 = sshll.u32 %s229_s8, 3  ;;  %s1073_s14 = sshll.u32 %s1605_s21, 7 }
  0x4b   : > { %s1985_s11 = scalar_select %p1777_p5, 1, 0 }
  0x4c   : > { %s1986_s12 = scalar_select %p1781_p8, 1, 0 }
  0x4d   : > { %s1789_s17 = scalar_lea.hbm %s1971_s0, %s1073_s14  ;;  %s233_s22 = scalar_lea.vmem [#allocation2], %s1072_s13 }
  0x4e   : > { %s240_s23 = sshll.u32 %s233_s22, 4  ;;  %p1793_p7 = pnand %p1352_p2, %p1764_p12  ;;  %s241_s23 = int_to_ptr.vmem [resolvable:$true] %s240_s23 }
  0x4f   : > { %s230_s27 = scalar_lea.sflag [#allocation3], %s229_s8  ;;  %s1505_s28 = scalar_lea.hbm %s1789_s17, 128 }
  0x50   : > { %p1506_p9 = scmp.ne.s32.totalorder %s1789_s17, %s1505_s28  ;;  %p1507_p10 = pneg %p1793_p7 }
  0x51   : > { %s1510_s14 = scalar_lea.hbm %s1971_s0, 256  ;;  %p1511_p0 = scmp.lt.s32.totalorder %s1789_s17, %s1971_s0 }
  0x52   : > { %p1508_p11 = pnand %p1507_p10, %p1506_p9  ;;  %p1512_p12 = scmp.lt.s32.totalorder %s1510_s14, %s1505_s28 }
  0x54   : > { %p1509_p13 = pneg %p1508_p11  ;;  %p1513_p2 = por %p1512_p12, %p1511_p0 }
  0x56   : > { %p1514_p4 = pnand %p1513_p2, %p1509_p13 }
  0x58   : > { %1517 = shalt.err (!%p1514_p4)
}
  0x59   : > { %s1518_s10 = scalar_lea.vmem %s241_s23, 128  ;;  %s1613_s8 = smov [#allocation2]  }
  0x5a   : > { %p1519_p1 = scmp.ne.s32.totalorder %s241_s23, %s1518_s10  ;;  %s1523_s16 = sshll.u32 %s1613_s8, 4  ;;  %s1524_s16 = int_to_ptr.vmem [resolvable:$false] %s1523_s16 }
  0x5b   : > { %s1525_s22 = scalar_lea.vmem %s1524_s16, 256  ;;  %p1526_p9 = scmp.lt.s32.totalorder %s241_s23, %s1524_s16 }
  0x5c   : > { %p1521_p8 = pnand %p1519_p1, %p1507_p10  ;;  %p1527_p11 = scmp.lt.s32.totalorder %s1525_s22, %s1518_s10 }
  0x5e   : > { %p1522_p5 = pneg %p1521_p8  ;;  %p1528_p6 = por %p1527_p11, %p1526_p9 }
  0x60   : > { %p1529_p3 = pnand %p1528_p6, %p1522_p5 }
  0x62   : > { %1532 = shalt.err (!%p1529_p3)
}
  0x63   : > { %1343 = dma.hbm_to_vmem [thread:$0]  (!%p1793_p7), %s1789_s17, 128, %s241_s23, %s230_s27  }
  0x64   : > { %p1988_p13 = scmp.ne.s32.totalorder %s1981_s25, 0 }
  0x65   : > { %s1814_s28 = sand.u32 (!%p1988_p13), 1, %s1597_s19   ;;  %p1989_p1 = scmp.ne.s32.totalorder (!%p1988_p13), %s1984_s7, 0 }
  0x66   : > { %249 = sbr.rel (%p1988_p13) target bundleno = 582 (0x246), region = 40  ;;  %s1075_s30 = sshll.u32 (!%p1988_p13), %s1814_s28, 3 }
  0x67   : > { %s252_s6 = scalar_lea.sflag (!%p1988_p13), [#allocation3], %s1814_s28  ;;  %s1818_s14 = scalar_lea.vmem (!%p1988_p13), [#allocation2], %s1075_s30 }
  0x6b   : > { %1576 = dma.done.wait (%p1989_p1), %s252_s6, 128  }
  0x6c   : > { %1578 = vsyncadd (%p1989_p1), %s252_s6, 4294967168  ;;  %p1990_p3 = scmp.eq.s32.totalorder %s1671_s24, 0 }
  0x6e   : > { %1580 = dma.done.wait (%p1990_p3), [#allocation6], 4096   ;;  %p1991_p4 = pmov %p1990_p3 }
  0x6f   : > { %p1992_p6 = pmov %p1990_p3 }
  0x70   : > { %1582 = vsyncadd (%p1991_p4), [#allocation6], 4294963200 }
  0x71   : > { %1584 = dma.done.wait (%p1992_p6), [#allocation9], 4096   ;;  %p1993_p5 = pmov %p1990_p3 }
  0x72   : > { %v1614_v0 = vmov 0.0   ;;  %vm1615_vm0 = vmmov 0   ;;  %v315_v1 = vld [vmem:[#allocation5 + $0x78] sm:$0xff]  ;;  %v314_v3 = vld [vmem:[#allocation5 + $0x70] sm:$0xff]  ;;  %v313_v5 = vld [vmem:[#allocation5 + $0x68] sm:$0xff]  ;;  %s1080_s25 = sshll.u32 %s1814_s28, 5 }
  0x73   : > { %1586 = vsyncadd (%p1993_p5), [#allocation9], 4294963200  ;;  %1161 = vmatprep.subr.mxu0 %v1614_v0  ;;  %1196 = vmatprep.subr.mxu1 %v1614_v0  ;;  %v401_v2 = vld [vmem:[#allocation7 + $0x78] sm:$0xff]  ;;  %v400_v4 = vld [vmem:[#allocation7 + $0x70] sm:$0xff]  ;;  %s297_s7 = scalar_lea.vmem [#allocation11], %s1080_s25  ;;  %s1086_s23 = sshll.u32 %s1671_s24, 9 }
  0x74   : > { %1193 = vmatprep.mubr.msk.f32.mxu0 %vm1615_vm0, %v1614_v0  ;;  %1228 = vmatprep.mubr.msk.f32.mxu1 %vm1615_vm0, %v1614_v0  ;;  %v399_v6 = vld [vmem:[#allocation7 + $0x68] sm:$0xff]  ;;  %v312_v7 = vld [vmem:[#allocation5 + $0x60] sm:$0xff]  ;;  %v311_v9 = vld [vmem:[#allocation5 + $0x58] sm:$0xff]  ;;  %s954_s17 = sshll.u32 %s297_s7, 4  ;;  %s1928_s13 = scalar_lea.hbm %s1976_s5, %s1086_s23  ;;  %s1923_s17 = int_to_ptr.vmem [resolvable:$true] %s954_s17 }
  0x75   : > { %1162 = vmatpush3.msra.mxu0 %v315_v1  ;;  %1197 = vmatpush3.msra.mxu1 %v401_v2  ;;  %v398_v8 = vld [vmem:[#allocation7 + $0x60] sm:$0xff]  ;;  %v397_v10 = vld [vmem:[#allocation7 + $0x58] sm:$0xff]  ;;  %v310_v11 = vld [vmem:[#allocation5 + $0x50] sm:$0xff]  ;;  %v1616_v2 = vmov 1966171168   ;;  %s941_s15 = scalar_lea.sflag [#allocation4], %s1814_s28 }
  0x76   : > { %1163 = vmatprep.subr.mxu0 %v1614_v0  ;;  %1198 = vmatprep.subr.mxu1 %v1614_v0  ;;  %v396_v12 = vld [vmem:[#allocation7 + $0x50] sm:$0xff]  ;;  %v309_v13 = vld [vmem:[#allocation5 + $0x48] sm:$0xff]  ;;  %v308_v15 = vld [vmem:[#allocation5 + $0x40] sm:$0xff]  ;;  %s1533_s10 = scalar_lea.vmem %s1923_s17, 512  ;;  %p1994_p7 = scmp.ne.s32.totalorder %s1985_s11, 0 }
  0x77   : > { %1164 = vmatpush3.msra.mxu0 %v314_v3  ;;  %1199 = vmatpush3.msra.mxu1 %v400_v4  ;;  %v395_v14 = vld [vmem:[#allocation7 + $0x48] sm:$0xff]  ;;  %v394_v16 = vld [vmem:[#allocation7 + $0x40] sm:$0xff]  ;;  %v307_v17 = vld [vmem:[#allocation5 + $0x38] sm:$0xff]  ;;  %v475_v3 = vunpack.c.l.s4 %v1616_v2  ;;  %v477_v4 = vlaneseq  ;;  %p1534_p8 = scmp.ne.s32.totalorder %s1923_s17, %s1533_s10  ;;  %s1617_s24 = smov [#allocation11]  }
  0x78   : > { %1165 = vmatprep.subr.mxu0 %v1614_v0  ;;  %1200 = vmatprep.subr.mxu1 %v1614_v0  ;;  %v393_v18 = vld [vmem:[#allocation7 + $0x38] sm:$0xff]  ;;  %v306_v19 = vld [vmem:[#allocation5 + $0x30] sm:$0xff]  ;;  %v305_v21 = vld [vmem:[#allocation5 + $0x28] sm:$0xff]  ;;  %s1537_s8 = sshll.u32 %s1617_s24, 4  ;;  %s1538_s8 = int_to_ptr.vmem [resolvable:$false] %s1537_s8 }
  0x79   : > { %1166 = vmatpush3.msra.mxu0 %v313_v5  ;;  %1201 = vmatpush3.msra.mxu1 %v399_v6  ;;  %v392_v20 = vld [vmem:[#allocation7 + $0x30] sm:$0xff]  ;;  %v391_v22 = vld [vmem:[#allocation7 + $0x28] sm:$0xff]  ;;  %v304_v23 = vld [vmem:[#allocation5 + $0x20] sm:$0xff]  ;;  %v476_v5 = vunpack.c.0.s8 %v475_v3  ;;  %v478_v6 = vshrl.u32 %v477_v4, 7  ;;  %p1535_p10 = pnand %p1534_p8, %p1994_p7  ;;  %s1539_s16 = scalar_lea.vmem %s1538_s8, 1024 }
  0x7a   : > { %1167 = vmatprep.subr.mxu0 %v1614_v0  ;;  %1202 = vmatprep.subr.mxu1 %v1614_v0  ;;  %v390_v24 = vld [vmem:[#allocation7 + $0x20] sm:$0xff]  ;;  %v303_v25 = vld [vmem:[#allocation5 + $0x18] sm:$0xff]  ;;  %v302_v27 = vld [vmem:[#allocation5 + $0x10] sm:$0xff]  ;;  %p1540_p12 = scmp.lt.s32.totalorder %s1923_s17, %s1538_s8  ;;  %p1541_p2 = scmp.lt.s32.totalorder %s1539_s16, %s1533_s10 }
  0x7b   : > { %1168 = vmatpush3.msra.mxu0 %v312_v7  ;;  %1203 = vmatpush3.msra.mxu1 %v398_v8  ;;  %v389_v26 = vld [vmem:[#allocation7 + $0x18] sm:$0xff]  ;;  %v388_v28 = vld [vmem:[#allocation7 + $0x10] sm:$0xff]  ;;  %v301_v29 = vld [vmem:[#allocation5 + $0x8] sm:$0xff]  ;;  %v1867_v7 = vsub.s32 %v476_v5, %v478_v6  ;;  %p1536_p0 = pneg %p1535_p10 }
  0x7c   : > { %1169 = vmatprep.subr.mxu0 %v1614_v0  ;;  %1204 = vmatprep.subr.mxu1 %v1614_v0  ;;  %v387_v30 = vld [vmem:[#allocation7 + $0x8] sm:$0xff]  ;;  %v300_v31 = vld [vmem:[#allocation5] sm:$0xff]  ;;  %v299_v33 = vld [vmem:[%s1818_s14] sm:$0xff]  ;;  %p1542_p9 = por %p1541_p2, %p1540_p12 }
  0x7d   : > { %1170 = vmatpush3.msra.mxu0 %v311_v9  ;;  %1205 = vmatpush3.msra.mxu1 %v397_v10  ;;  %v386_v32 = vld [vmem:[#allocation7] sm:$0xff]  ;;  %v733_v34 = vld [vmem:[#allocation10 + $0x78] sm:$0xff]  ;;  %v732_v36 = vld [vmem:[#allocation10 + $0x70] sm:$0xff]  ;;  %v1869_v10 = vsub.s32 0, %v478_v6 }
  0x7e   : > { %1171 = vmatprep.subr.mxu0 %v1614_v0  ;;  %1206 = vmatprep.subr.mxu1 %v1614_v0  ;;  %v717_v35 = vld [vmem:[#allocation8 + $0x78] sm:$0xff]  ;;  %v716_v37 = vld [vmem:[#allocation8 + $0x70] sm:$0xff]  ;;  %v731_v38 = vld [vmem:[#allocation10 + $0x68] sm:$0xff]  ;;  %p1543_p11 = pnand %p1542_p9, %p1536_p0 }
  0x7f   : > { %1172 = vmatpush3.msra.mxu0 %v310_v11  ;;  %1207 = vmatpush3.msra.mxu1 %v396_v12  ;;  %v715_v39 = vld [vmem:[#allocation8 + $0x68] sm:$0xff]  ;;  %v730_v40 = vld [vmem:[#allocation10 + $0x60] sm:$0xff]  ;;  %v729_v42 = vld [vmem:[#allocation10 + $0x58] sm:$0xff] }
  0x80   : > { %1173 = vmatprep.subr.mxu0 %v1614_v0  ;;  %1208 = vmatprep.subr.mxu1 %v1614_v0  ;;  %v714_v41 = vld [vmem:[#allocation8 + $0x60] sm:$0xff]  ;;  %v713_v43 = vld [vmem:[#allocation8 + $0x58] sm:$0xff]  ;;  %v728_v44 = vld [vmem:[#allocation10 + $0x50] sm:$0xff] }
  0x81   : > { %1174 = vmatpush3.msra.mxu0 %v309_v13  ;;  %1209 = vmatpush3.msra.mxu1 %v395_v14  ;;  %v712_v45 = vld [vmem:[#allocation8 + $0x50] sm:$0xff]  ;;  %v727_v46 = vld [vmem:[#allocation10 + $0x48] sm:$0xff]  ;;  %v726_v48 = vld [vmem:[#allocation10 + $0x40] sm:$0xff] }
  0x82   : > { %1175 = vmatprep.subr.mxu0 %v1614_v0  ;;  %1210 = vmatprep.subr.mxu1 %v1614_v0  ;;  %v711_v47 = vld [vmem:[#allocation8 + $0x48] sm:$0xff]  ;;  %v710_v49 = vld [vmem:[#allocation8 + $0x40] sm:$0xff]  ;;  %v725_v50 = vld [vmem:[#allocation10 + $0x38] sm:$0xff] }
  0x83   : > { %1176 = vmatpush3.msra.mxu0 %v308_v15  ;;  %1211 = vmatpush3.msra.mxu1 %v394_v16  ;;  %v709_v51 = vld [vmem:[#allocation8 + $0x38] sm:$0xff]  ;;  %v724_v52 = vld [vmem:[#allocation10 + $0x30] sm:$0xff]  ;;  %v723_v54 = vld [vmem:[#allocation10 + $0x28] sm:$0xff] }
  0x84   : > { %1177 = vmatprep.subr.mxu0 %v1614_v0  ;;  %1212 = vmatprep.subr.mxu1 %v1614_v0  ;;  %v708_v53 = vld [vmem:[#allocation8 + $0x30] sm:$0xff]  ;;  %v707_v55 = vld [vmem:[#allocation8 + $0x28] sm:$0xff]  ;;  %v722_v56 = vld [vmem:[#allocation10 + $0x20] sm:$0xff] }
  0x85   : > { %1178 = vmatpush3.msra.mxu0 %v307_v17  ;;  %1213 = vmatpush3.msra.mxu1 %v393_v18  ;;  %v706_v57 = vld [vmem:[#allocation8 + $0x20] sm:$0xff]  ;;  %v721_v58 = vld [vmem:[#allocation10 + $0x18] sm:$0xff]  ;;  %v720_v60 = vld [vmem:[#allocation10 + $0x10] sm:$0xff] }
  0x86   : > { %1179 = vmatprep.subr.mxu0 %v1614_v0  ;;  %1214 = vmatprep.subr.mxu1 %v1614_v0  ;;  %v705_v59 = vld [vmem:[#allocation8 + $0x18] sm:$0xff]  ;;  %v704_v61 = vld [vmem:[#allocation8 + $0x10] sm:$0xff]  ;;  %v719_v62 = vld [vmem:[#allocation10 + $0x8] sm:$0xff] }
  0x87   : > { %1180 = vmatpush3.msra.mxu0 %v306_v19  ;;  %1215 = vmatpush3.msra.mxu1 %v392_v20  ;;  %v703_v63 = vld [vmem:[#allocation8 + $0x8] sm:$0xff]  ;;  %v702_v1 = vld [vmem:[#allocation8] sm:$0xff] }
  0x88   : > { %1181 = vmatprep.subr.mxu0 %v1614_v0  ;;  %1216 = vmatprep.subr.mxu1 %v1614_v0 }
  0x89   : > { %1182 = vmatpush3.msra.mxu0 %v305_v21  ;;  %1217 = vmatpush3.msra.mxu1 %v391_v22 }
  0x8a   : > { %1183 = vmatprep.subr.mxu0 %v1614_v0  ;;  %1218 = vmatprep.subr.mxu1 %v1614_v0 }
  0x8b   : > { %1184 = vmatpush3.msra.mxu0 %v304_v23  ;;  %1219 = vmatpush3.msra.mxu1 %v390_v24 }
  0x8c   : > { %1185 = vmatprep.subr.mxu0 %v1614_v0  ;;  %1220 = vmatprep.subr.mxu1 %v1614_v0 }
  0x8d   : > { %1186 = vmatpush3.msra.mxu0 %v303_v25  ;;  %1221 = vmatpush3.msra.mxu1 %v389_v26 }
  0x8e   : > { %1187 = vmatprep.subr.mxu0 %v1614_v0  ;;  %1222 = vmatprep.subr.mxu1 %v1614_v0 }
  0x8f   : > { %1188 = vmatpush3.msra.mxu0 %v302_v27  ;;  %1223 = vmatpush3.msra.mxu1 %v388_v28 }
  0x90   : > { %1189 = vmatprep.subr.mxu0 %v1614_v0  ;;  %1224 = vmatprep.subr.mxu1 %v1614_v0 }
  0x91   : > { %1190 = vmatpush3.msra.mxu0 %v301_v29  ;;  %1225 = vmatpush3.msra.mxu1 %v387_v30 }
  0x92   : > { %1191 = vmatprep.subr.mxu0 %v1614_v0  ;;  %1226 = vmatprep.subr.mxu1 %v1614_v0  ;;  %v718_v0 = vld [vmem:[#allocation10] sm:$0xff] }
  0x93   : > { %1192 = vmatpush3.msra.mxu0 %v300_v31  ;;  %1227 = vmatpush3.msra.mxu1 %v386_v32 }
  0x94   : > { %1194 = vmatmul.mubr.f32.vlgmr.msra.gmra.mxu0 %v299_v33  ;;  %1229 = vmatmul.mubr.f32.vlgmr.msra.gmra.mxu1 %v299_v33 }
  0x95   : > { %1231 = vmatprep.subr.mxu0 %v733_v34  ;;  %1269 = vmatprep.subr.mxu1 %v717_v35 }
  0x96   : > { %1232 = vmatpush3.msra.mxu0 %v733_v34  ;;  %1270 = vmatpush3.msra.mxu1 %v717_v35 }
  0x97   : > { %1233 = vmatprep.subr.mxu0 %v732_v36  ;;  %1271 = vmatprep.subr.mxu1 %v716_v37 }
  0x98   : > { %1234 = vmatpush3.msra.mxu0 %v732_v36  ;;  %1272 = vmatpush3.msra.mxu1 %v716_v37 }
  0x99   : > { %1235 = vmatprep.subr.mxu0 %v731_v38  ;;  %1273 = vmatprep.subr.mxu1 %v715_v39 }
  0x9a   : > { %1236 = vmatpush3.msra.mxu0 %v731_v38  ;;  %1274 = vmatpush3.msra.mxu1 %v715_v39 }
  0x9b   : > { %1237 = vmatprep.subr.mxu0 %v730_v40  ;;  %1275 = vmatprep.subr.mxu1 %v714_v41 }
  0x9c   : > { %1238 = vmatpush3.msra.mxu0 %v730_v40  ;;  %1276 = vmatpush3.msra.mxu1 %v714_v41 }
  0x9d   : > { %1239 = vmatprep.subr.mxu0 %v729_v42  ;;  %1277 = vmatprep.subr.mxu1 %v713_v43 }
  0x9e   : > { %1240 = vmatpush3.msra.mxu0 %v729_v42  ;;  %1278 = vmatpush3.msra.mxu1 %v713_v43 }
  0x9f   : > { %1241 = vmatprep.subr.mxu0 %v728_v44  ;;  %1279 = vmatprep.subr.mxu1 %v712_v45 }
  0xa0   : > { %1242 = vmatpush3.msra.mxu0 %v728_v44  ;;  %1280 = vmatpush3.msra.mxu1 %v712_v45 }
  0xa1   : > { %1243 = vmatprep.subr.mxu0 %v727_v46  ;;  %1281 = vmatprep.subr.mxu1 %v711_v47 }
  0xa2   : > { %1244 = vmatpush3.msra.mxu0 %v727_v46  ;;  %1282 = vmatpush3.msra.mxu1 %v711_v47 }
  0xa3   : > { %1245 = vmatprep.subr.mxu0 %v726_v48  ;;  %1283 = vmatprep.subr.mxu1 %v710_v49 }
  0xa4   : > { %1246 = vmatpush3.msra.mxu0 %v726_v48  ;;  %1284 = vmatpush3.msra.mxu1 %v710_v49 }
  0xa5   : > { %1247 = vmatprep.subr.mxu0 %v725_v50  ;;  %1285 = vmatprep.subr.mxu1 %v709_v51 }
  0xa6   : > { %1248 = vmatpush3.msra.mxu0 %v725_v50  ;;  %1286 = vmatpush3.msra.mxu1 %v709_v51 }
  0xa7   : > { %1249 = vmatprep.subr.mxu0 %v724_v52  ;;  %1287 = vmatprep.subr.mxu1 %v708_v53 }
  0xa8   : > { %1250 = vmatpush3.msra.mxu0 %v724_v52  ;;  %1288 = vmatpush3.msra.mxu1 %v708_v53 }
  0xa9   : > { %1251 = vmatprep.subr.mxu0 %v723_v54  ;;  %1289 = vmatprep.subr.mxu1 %v707_v55 }
  0xaa   : > { %1252 = vmatpush3.msra.mxu0 %v723_v54  ;;  %1290 = vmatpush3.msra.mxu1 %v707_v55 }
  0xab   : > { %1253 = vmatprep.subr.mxu0 %v722_v56  ;;  %1291 = vmatprep.subr.mxu1 %v706_v57 }
  0xac   : > { %1254 = vmatpush3.msra.mxu0 %v722_v56  ;;  %1292 = vmatpush3.msra.mxu1 %v706_v57 }
  0xad   : > { %1255 = vmatprep.subr.mxu0 %v721_v58  ;;  %1293 = vmatprep.subr.mxu1 %v705_v59 }
  0xae   : > { %1256 = vmatpush3.msra.mxu0 %v721_v58  ;;  %1294 = vmatpush3.msra.mxu1 %v705_v59 }
  0xaf   : > { %1257 = vmatprep.subr.mxu0 %v720_v60  ;;  %1295 = vmatprep.subr.mxu1 %v704_v61 }
  0xb0   : > { %1258 = vmatpush3.msra.mxu0 %v720_v60  ;;  %1296 = vmatpush3.msra.mxu1 %v704_v61 }
  0xb1   : > { %1259 = vmatprep.subr.mxu0 %v719_v62  ;;  %1297 = vmatprep.subr.mxu1 %v703_v63 }
  0xb2   : > { %1260 = vmatpush3.msra.mxu0 %v719_v62  ;;  %1298 = vmatpush3.msra.mxu1 %v703_v63 }
  0xb3   : > { %1261 = vmatprep.subr.mxu0 %v718_v0  ;;  %1299 = vmatprep.subr.mxu1 %v702_v1 }
  0xb4   : > { %1262 = vmatpush3.msra.mxu0 %v718_v0  ;;  %1300 = vmatpush3.msra.mxu1 %v702_v1 }
 0x154   : > { %v382_v8 = vpop.f32.mrf.mxu0  ;;  %v468_v9 = vpop.f32.mrf.mxu1 }
 0x155   : > { %v1871_v11 = vcombine.high %v382_v8, %v382_v8  ;;  %v1873_v12 = vcombine.high %v468_v9, %v468_v9  ;;  %v480_v13 = vrot.slane %v382_v8, %v1867_v7  ;;  %v570_v14 = vrot.slane %v468_v9, %v1867_v7 }
 0x156   : > { %v1195_v15 = vpop.f32.mrf.mxu0  ;;  %v1230_v16 = vpop.f32.mrf.mxu1 }
 0x157   : > { %v488_v17 = vcombine.high %v480_v13, %v480_v13  ;;  %v496_v18 = vrot.slane %v480_v13, %v1867_v7  ;;  %v578_v19 = vcombine.high %v570_v14, %v570_v14  ;;  %v586_v20 = vrot.slane %v570_v14, %v1867_v7 }
 0x158   : > { %v487_v21 = vrot.slane %v1871_v11, %v1867_v7  ;;  %v577_v22 = vrot.slane %v1873_v12, %v1867_v7 }
 0x159   : > { %v510_v23 = vrot.slane %v488_v17, %v1867_v7  ;;  %v518_v24 = vcombine.high %v496_v18, %v496_v18  ;;  %v525_v25 = vrot.slane %v496_v18, %v1869_v10  ;;  %v600_v26 = vrot.slane %v578_v19, %v1867_v7 }
 0x15a   : > { %v608_v27 = vcombine.high %v586_v20, %v586_v20  ;;  %v615_v28 = vrot.slane %v586_v20, %v1869_v10  ;;  %v489_v29 = vcombine.high %v487_v21, %v487_v21  ;;  %v503_v30 = vrot.slane %v487_v21, %v1867_v7 }
 0x15b   : > { %v520_v31 = vcombine.high %v510_v23, %v510_v23  ;;  %v529_v32 = vrot.slane %v510_v23, %v1869_v10  ;;  %v610_v33 = vcombine.high %v600_v26, %v600_v26  ;;  %v619_v34 = vrot.slane %v600_v26, %v1869_v10 }
 0x15c   : > { %v678_v35 = vmul.f32 %v615_v28, %v382_v8  ;;  %v686_v36 = vmul.f32 %v525_v25, %v468_v9  ;;  %v654_v37 = vmul.f32 %v525_v25, %v382_v8  ;;  %v662_v38 = vmul.f32 %v615_v28, %v468_v9 }
 0x15d   : > { %v679_v39 = vmul.f32 %v619_v34, %v382_v8  ;;  %v687_v40 = vmul.f32 %v529_v32, %v468_v9  ;;  %v655_v41 = vmul.f32 %v529_v32, %v382_v8  ;;  %v663_v42 = vmul.f32 %v619_v34, %v468_v9 }
 0x15e   : > { %v694_v43 = vsub.f32 %v678_v35, %v686_v36  ;;  %v670_v44 = vadd.f32 %v662_v38, %v654_v37  ;;  %v533_v45 = vrot.slane %v518_v24, %v1869_v10  ;;  %v537_v46 = vrot.slane %v520_v31, %v1869_v10 }
 0x15f   : > { %v695_v47 = vsub.f32 %v679_v39, %v687_v40  ;;  %v671_v48 = vadd.f32 %v663_v42, %v655_v41  ;;  %v623_v49 = vrot.slane %v608_v27, %v1869_v10  ;;  %v627_v50 = vrot.slane %v610_v33, %v1869_v10 }
 0x160   : > { %v688_v51 = vmul.f32 %v533_v45, %v468_v9  ;;  %v689_v52 = vmul.f32 %v537_v46, %v468_v9  ;;  %v656_v53 = vmul.f32 %v533_v45, %v382_v8  ;;  %v657_v54 = vmul.f32 %v537_v46, %v382_v8 }
 0x161   : > { %v742_v55 = vcombine.low %v694_v43, %v695_v47  ;;  %v843_v56 = vcombine.low %v670_v44, %v671_v48  ;;  %v680_v57 = vmul.f32 %v623_v49, %v382_v8  ;;  %v681_v58 = vmul.f32 %v627_v50, %v382_v8 }
 0x162   : > { %v664_v59 = vmul.f32 %v623_v49, %v468_v9  ;;  %v665_v60 = vmul.f32 %v627_v50, %v468_v9  ;;  %v517_v61 = vrot.slane %v489_v29, %v1867_v7  ;;  %v541_v62 = vrot.slane %v503_v30, %v1869_v10 }
 0x163   : > { %1263 = vmatprep.mubr.f32.mxu0 %v742_v55  ;;  %1301 = vmatprep.mubr.f32.mxu1 %v843_v56  ;;  %v696_v63 = vsub.f32 %v680_v57, %v688_v51  ;;  %v697_v0 = vsub.f32 %v681_v58, %v689_v52  ;;  %v579_v1 = vcombine.high %v577_v22, %v577_v22 }
 0x164   : > { %v672_v2 = vadd.f32 %v664_v59, %v656_v53  ;;  %v673_v3 = vadd.f32 %v665_v60, %v657_v54  ;;  %v545_v4 = vrot.slane %v517_v61, %v1869_v10  ;;  %v593_v5 = vrot.slane %v577_v22, %v1867_v7 }
 0x165   : > { %v743_v6 = vcombine.low %v696_v63, %v697_v0  ;;  %v607_v8 = vrot.slane %v579_v1, %v1867_v7  ;;  %v690_v9 = vmul.f32 %v1873_v12, %v541_v62  ;;  %v658_v13 = vmul.f32 %v541_v62, %v1871_v11 }
 0x166   : > { %v844_v14 = vcombine.low %v672_v2, %v673_v3  ;;  %v631_v15 = vrot.slane %v593_v5, %v1869_v10  ;;  %v691_v16 = vmul.f32 %v1873_v12, %v545_v4  ;;  %v659_v17 = vmul.f32 %v545_v4, %v1871_v11 }
 0x167   : > { %1264 = vmatmul.mubr.f32.vlgmr.msra.gmra.mxu0 %v743_v6  ;;  %v635_v18 = vrot.slane %v607_v8, %v1869_v10  ;;  %v519_v19 = vcombine.high %v503_v30, %v503_v30  ;;  %v521_v20 = vcombine.high %v517_v61, %v517_v61  ;;  %v609_v21 = vcombine.high %v593_v5, %v593_v5 }
 0x168   : > { %1302 = vmatmul.mubr.f32.vlgmr.msra.gmra.mxu1 %v844_v14  ;;  %v682_v7 = vmul.f32 %v631_v15, %v1871_v11  ;;  %v666_v22 = vmul.f32 %v631_v15, %v1873_v12  ;;  %v611_v23 = vcombine.high %v607_v8, %v607_v8 }
 0x169   : > { %v683_v24 = vmul.f32 %v635_v18, %v1871_v11  ;;  %v667_v25 = vmul.f32 %v635_v18, %v1873_v12  ;;  %v549_v26 = vrot.slane %v519_v19, %v1869_v10  ;;  %v553_v27 = vrot.slane %v521_v20, %v1869_v10 }
 0x16a   : > { %v698_v28 = vsub.f32 %v682_v7, %v690_v9  ;;  %v674_v29 = vadd.f32 %v666_v22, %v658_v13  ;;  %v639_v30 = vrot.slane %v609_v21, %v1869_v10  ;;  %v643_v31 = vrot.slane %v611_v23, %v1869_v10 }
 0x16b   : > { %v699_v32 = vsub.f32 %v683_v24, %v691_v16  ;;  %v675_v33 = vadd.f32 %v667_v25, %v659_v17  ;;  %v692_v34 = vmul.f32 %v1873_v12, %v549_v26  ;;  %v693_v35 = vmul.f32 %v1873_v12, %v553_v27 }
 0x16c   : > { %v684_v36 = vmul.f32 %v639_v30, %v1871_v11  ;;  %v685_v37 = vmul.f32 %v643_v31, %v1871_v11  ;;  %v660_v38 = vmul.f32 %v549_v26, %v1871_v11  ;;  %v661_v39 = vmul.f32 %v553_v27, %v1871_v11 }
 0x16d   : > { %v744_v40 = vcombine.low %v698_v28, %v699_v32  ;;  %v845_v41 = vcombine.low %v674_v29, %v675_v33  ;;  %v668_v42 = vmul.f32 %v639_v30, %v1873_v12  ;;  %v669_v10 = vmul.f32 %v643_v31, %v1873_v12 }
 0x16e   : > { %v700_v43 = vsub.f32 %v684_v36, %v692_v34  ;;  %v701_v44 = vsub.f32 %v685_v37, %v693_v35 }
 0x16f   : > { %1266 = vmatprep.mubr.f32.mxu0 %v744_v40  ;;  %1304 = vmatprep.mubr.f32.mxu1 %v845_v41  ;;  %v676_v45 = vadd.f32 %v668_v42, %v660_v38  ;;  %v677_v46 = vadd.f32 %v669_v10, %v661_v39 }
 0x170   : > { %v745_v47 = vcombine.low %v700_v43, %v701_v44 }
 0x171   : > { %v846_v48 = vcombine.low %v676_v45, %v677_v46 }
 0x172   : > { %1267 = vmatmul.mubr.f32.gmra.mxu0 %v745_v47 }
 0x173   : > { %1305 = vmatmul.mubr.f32.gmra.mxu1 %v846_v48 }
 0x227   : > { %v1265_v49 = vpop.f32.mrf.mxu0 }
 0x228   : > { %v1303_v11 = vpop.f32.mrf.mxu1 }
 0x229   : > { %v923_v50 = vadd.f32 %v1303_v11, %v1265_v49  ;;  %v816_v51 = vpop.f32.mrf.mxu0 }
 0x22a   : > { %v917_v52 = vpop.f32.mrf.mxu1 }
 0x22b   : > { %937 = vst [vmem:[%s297_s7 + $0x8] sm:$0xff] %v923_v50  ;;  %v918_v12 = vadd.f32 %v917_v52, %v816_v51 }
 0x22d   : > { %936 = vst [vmem:[%s297_s7] sm:$0xff] %v918_v12 }
 0x232   : > { %v1268_v53 = vpop.f32.mrf.mxu0 }
 0x233   : > { %v1306_v54 = vpop.f32.mrf.mxu1 }
 0x234   : > { %v933_v55 = vadd.f32 %v1306_v54, %v1268_v53  ;;  %v826_v56 = vpop.f32.mrf.mxu0 }
 0x235   : > { %v927_v57 = vpop.f32.mrf.mxu1 }
 0x236   : > { %939 = vst [vmem:[%s297_s7 + $0x18] sm:$0xff] %v933_v55  ;;  %v928_v58 = vadd.f32 %v927_v57, %v826_v56 }
 0x238   : > { %938 = vst [vmem:[%s297_s7 + $0x10] sm:$0xff] %v928_v58 }
 0x239   : > { %1546 = shalt.err (!%p1543_p11)
}
 0x23a   : > { %s1547_s22 = scalar_lea.hbm %s1928_s13, 512  ;;  %s1551_s14 = scalar_lea.hbm %s1976_s5, 1024 }
 0x23b   : > { %p1548_p13 = scmp.ne.s32.totalorder %s1928_s13, %s1547_s22  ;;  %p1552_p4 = scmp.lt.s32.totalorder %s1928_s13, %s1976_s5 }
 0x23c   : > { %p1553_p6 = scmp.lt.s32.totalorder %s1551_s14, %s1547_s22 }
 0x23d   : > { %p1549_p1 = pnand %p1548_p13, %p1994_p7 }
 0x23e   : > { %p1554_p5 = por %p1553_p6, %p1552_p4 }
 0x23f   : > { %p1550_p3 = pneg %p1549_p1 }
 0x241   : > { %p1555_p8 = pnand %p1554_p5, %p1550_p3 }
 0x243   : > { %1558 = shalt.err (!%p1555_p8)
}
 0x244   : > { %s1618_s23 = smov 128   ;;  %s1619_s26 = smov 8  }
 0x245   : > { %1325 = dma.vmem_to_hbm [thread:$0]  (%p1994_p7), %s1923_s17, 512, %s1928_s13, %s941_s15, %s1618_s23, %s1618_s23, %s1619_s26  }
 0x246 PF: > { %s969_s27 = sand.u32 1, %s1593_s18   ;;  %p1995_p10 = scmp.ne.s32.totalorder %s1986_s12, 0 }
 0x247   : > { %p1996_p0 = scmp.ge.s32.totalorder %s1605_s21, 2  ;;  %s970_s10 = scalar_lea.sflag [#allocation4], %s969_s27 }
 0x249   : > { %p1345_p12 = pnand %p1996_p0, %p1995_p10 }
 0x24b   : > { %p1346_p2 = pneg %p1345_p12 }
 0x24d   : > { %1588 = dma.done.wait (%p1346_p2), %s970_s10, 512  }
 0x24e   : > { %1590 = vsyncadd (%p1346_p2), %s970_s10, 4294966784  ;;  %p20_p9 = scmp.ge.s32.totalorder %s1751_s29, 4   ;;  %s1997_s18 = smov %s1597_s19 }
 0x24f   : > { %s1998_s19 = smov %s1601_s20  ;;  %s1999_s20 = smov %s1762_s9 }
 0x250   : > { %s2000_s21 = smov %s1751_s29  ;;  %22 = sbr.rel (!%p20_p9) target bundleno = 7 (0x7), region = 101 }
 0x255   :  { %975 = vsyncpa [#allocation3], 1 }
 0x256   :  { %977 = vsyncpa [#allocation3 + $0x1], 1 }
 0x257   :  { %978 = vsyncpa [#allocation6], 1 }
 0x258   :  { %979 = vsyncpa [#allocation9], 1 }
 0x259   :  { %980 = vsyncpa [#allocation4], 1 }
 0x25a   :  { %982 = vsyncpa [#allocation4 + $0x1], 1 }

// kernel: tpu_custom_call.1
= control target key start
LH: loop header
LB: loop body
LE: loop exit
PB: predicated region body
PF: predicated region fallthrough
CT: control target
= control target key end

     0   :  { %10 = vsyncpa [#allocation3], 0  ;;  %s1971_s0 = inlined_call_operand.hbm [shape: f32[16,128], index: 0, kind: input, shape index: {}]   ;;  %s1972_s1 = inlined_call_operand.hbm [shape: f32[128,128], index: 1, kind: input, shape index: {}]   ;;  %s1973_s2 = inlined_call_operand.hbm [shape: f32[128,128], index: 2, kind: input, shape index: {}]   ;;  %s1974_s3 = inlined_call_operand.hbm [shape: f32[128,128], index: 3, kind: input, shape index: {}]   ;;  %s1975_s4 = inlined_call_operand.hbm [shape: f32[128,128], index: 4, kind: input, shape index: {}]   ;;  %s1976_s5 = inlined_call_operand.hbm [shape: f32[64,128], index: 5, kind: output, shape index: {}]  }
   0x1   :  { %12 = vsyncpa [#allocation3 + $0x1], 0 }
   0x2   :  { %13 = vsyncpa [#allocation6], 0 }
   0x3   :  { %14 = vsyncpa [#allocation9], 0 }
   0x4   :  { %15 = vsyncpa [#allocation4], 0 }
   0x5   :  { %17 = vsyncpa [#allocation4 + $0x1], 0  ;;  %s1650_s18 = smov 0   ;;  %s1652_s19 = smov 0  }
   0x6   :  { %s1654_s20 = smov 0   ;;  %s1656_s21 = smov 0  }
   0x7 LB: > { %s1607_s22 = smov [#allocation5]   ;;  %s1671_s24 = sadd.s32 4294967295, %s1605_s21   ;;  %s1605_s21 = sphi %s1656_s21, %s2000_s21   ;;  %s1601_s20 = sphi %s1654_s20, %s1999_s20   ;;  %s1597_s19 = sphi %s1652_s19, %s1998_s19   ;;  %s1593_s18 = sphi %s1650_s18, %s1997_s18  }
   0x8   : > { %s176_s23 = sshll.u32 %s1607_s22, 4  ;;  %p1066_p0 = scmp.ge.s32.totalorder %s1605_s21, 1  ;;  %s177_s23 = int_to_ptr.vmem [resolvable:$true] %s176_s23 }
   0x9   : > { %p1977_p1 = scmp.eq.s32.totalorder %s1671_s24, 0  ;;  %p164_p2 = scmp.lt.s32.totalorder %s1605_s21, 3 }
   0xa   : > { %s1608_s26 = smov [#allocation8]   ;;  %s1609_s29 = smov [#allocation7]  }
   0xb   : > { %p1676_p3 = pnand %p1066_p0, %p164_p2  ;;  %s202_s27 = sshll.u32 %s1608_s26, 4  ;;  %s1689_s27 = int_to_ptr.vmem [resolvable:$true] %s202_s27 }
   0xc   : > { %s189_s30 = sshll.u32 %s1609_s29, 4  ;;  %s1412_s6 = scalar_lea.vmem %s177_s23, 2048  ;;  %s1691_s30 = int_to_ptr.vmem [resolvable:$true] %s189_s30 }
   0xd   : > { %s1981_s25 = scalar_select %p1676_p3, 1, 0 }
   0xe   : > { %p1327_p5 = pneg %p1676_p3  ;;  %p1413_p8 = scmp.ne.s32.totalorder %s177_s23, %s1412_s6 }
   0xf   : > { %p1420_p11 = scmp.lt.s32.totalorder %s177_s23, %s177_s23  ;;  %p1421_p12 = scmp.lt.s32.totalorder %s1412_s6, %s1412_s6 }
  0x10   : > { %p1685_p6 = pnand %p1327_p5, %p1977_p1 }
  0x11   : > { %p1422_p13 = por %p1421_p12, %p1420_p11 }
  0x12   : > { %p1403_p7 = pneg %p1685_p6 }
  0x14   : > { %p1415_p9 = pnand %p1413_p8, %p1403_p7 }
  0x16   : > { %p1416_p10 = pneg %p1415_p9 }
  0x18   : > { %p1423_p0 = pnand %p1422_p13, %p1416_p10 }
  0x1a   : > { %1426 = shalt.err (!%p1423_p0)
}
  0x1b   : > { %s1610_s7 = smov 128   ;;  %s1611_s8 = smov 8  }
  0x1c   : > { %1330 = dma.hbm_to_vmem [thread:$0]  (!%p1685_p6), %s1972_s1, 2048, %s177_s23, [#allocation6], %s1610_s7, %s1610_s7, %s1611_s8  }
  0x1d   : > { %s1438_s11 = scalar_lea.vmem %s1689_s27, 2048  ;;  %p1446_p9 = scmp.lt.s32.totalorder %s1689_s27, %s1689_s27 }
  0x1e   : > { %p1439_p2 = scmp.ne.s32.totalorder %s1689_s27, %s1438_s11  ;;  %p1447_p10 = scmp.lt.s32.totalorder %s1438_s11, %s1438_s11 }
  0x20   : > { %p1441_p5 = pnand %p1439_p2, %p1403_p7  ;;  %p1448_p11 = por %p1447_p10, %p1446_p9 }
  0x22   : > { %p1442_p8 = pneg %p1441_p5 }
  0x24   : > { %p1449_p12 = pnand %p1448_p11, %p1442_p8 }
  0x26   : > { %1452 = shalt.err (!%p1449_p12)
}
  0x27   : > { %1336 = dma.hbm_to_vmem [thread:$0]  (!%p1685_p6), %s1974_s3, 2048, %s1689_s27, [#allocation9], %s1610_s7, %s1610_s7, %s1611_s8  }
  0x28   : > { %s1464_s14 = scalar_lea.vmem %s1691_s30, 2048  ;;  %p1472_p5 = scmp.lt.s32.totalorder %s1691_s30, %s1691_s30 }
  0x29   : > { %p1465_p13 = scmp.ne.s32.totalorder %s1691_s30, %s1464_s14  ;;  %p1473_p8 = scmp.lt.s32.totalorder %s1464_s14, %s1464_s14 }
  0x2b   : > { %p1467_p0 = pnand %p1465_p13, %p1403_p7  ;;  %p1474_p9 = por %p1473_p8, %p1472_p5 }
  0x2d   : > { %p1468_p2 = pneg %p1467_p0 }
  0x2f   : > { %p1475_p10 = pnand %p1474_p9, %p1468_p2 }
  0x31   : > { %1478 = shalt.err (!%p1475_p10)
}
  0x32   : > { %1333 = dma.hbm_to_vmem [thread:$0]  (!%p1685_p6), %s1973_s2, 2048, %s1691_s30, [#allocation6], %s1610_s7, %s1610_s7, %s1611_s8  }
  0x33   : > { %s1612_s17 = smov [#allocation10]  }
  0x34   : > { %s215_s22 = sshll.u32 %s1612_s17, 4  ;;  %s216_s22 = int_to_ptr.vmem [resolvable:$true] %s215_s22 }
  0x35   : > { %s1490_s23 = scalar_lea.vmem %s216_s22, 2048  ;;  %p1498_p0 = scmp.lt.s32.totalorder %s216_s22, %s216_s22 }
  0x36   : > { %p1491_p11 = scmp.ne.s32.totalorder %s216_s22, %s1490_s23  ;;  %p1499_p2 = scmp.lt.s32.totalorder %s1490_s23, %s1490_s23 }
  0x38   : > { %p1493_p12 = pnand %p1491_p11, %p1403_p7  ;;  %p1500_p5 = por %p1499_p2, %p1498_p0 }
  0x3a   : > { %p1494_p13 = pneg %p1493_p12 }
  0x3c   : > { %p1501_p8 = pnand %p1500_p5, %p1494_p13 }
  0x3e   : > { %1504 = shalt.err (!%p1501_p8)
}
  0x3f   : > { %1339 = dma.hbm_to_vmem [thread:$0]  (!%p1685_p6), %s1975_s4, 2048, %s216_s22, [#allocation9], %s1610_s7, %s1610_s7, %s1611_s8  }
  0x40   : > { %s1065_s28 = sadd.s32 4294967294, %s1605_s21   ;;  %s1751_s29 = sadd.s32 1, %s1605_s21  }
  0x41   : > { %s27_s30 = ssub.s32 %s1605_s21, %s1751_s29  ;;  %s30_s6 = sadd.s32 1, %s1601_s20 }
  0x42   : > { %p28_p7 = scmp.eq.s32.totalorder %s27_s30, 0  ;;  %p37_p9 = scmp.ne.s32.totalorder %s1601_s20, %s1597_s19 }
  0x43   : > { %p38_p10 = scmp.eq.s32.totalorder %s1605_s21, 0  ;;  %p43_p11 = scmp.ne.s32.totalorder %s1597_s19, %s1593_s18 }
  0x44   : > { %s1762_s9 = scalar_select %p28_p7, %s1601_s20, %s30_s6  }
  0x45   : > { %p1764_p12 = por %p38_p10, %p37_p9  ;;  %p1770_p6 = por %p1977_p1, %p43_p11 }
  0x46   : > { %p151_p13 = scmp.eq.s32.totalorder %s1671_s24, 1  ;;  %p157_p0 = scmp.eq.s32.totalorder %s1065_s28, 1 }
  0x47   : > { %s1984_s7 = scalar_select %p1770_p6, 1, 0 }
  0x48   : > { %p1352_p2 = scmp.lt.s32.totalorder %s1605_s21, 2  ;;  %s229_s8 = sand.u32 1, %s1601_s20  }
  0x49   : > { %p1777_p5 = por %p151_p13, %p37_p9  ;;  %p1781_p8 = por %p157_p0, %p43_p11 }
  0x4a   : > { %s1072_s13 = sshll.u32 %s229_s8, 3  ;;  %s1073_s14 = sshll.u32 %s1605_s21, 7 }
  0x4b   : > { %s1985_s11 = scalar_select %p1777_p5, 1, 0 }
  0x4c   : > { %s1986_s12 = scalar_select %p1781_p8, 1, 0 }
  0x4d   : > { %s1789_s17 = scalar_lea.hbm %s1971_s0, %s1073_s14  ;;  %s233_s22 = scalar_lea.vmem [#allocation2], %s1072_s13 }
  0x4e   : > { %s240_s23 = sshll.u32 %s233_s22, 4  ;;  %p1793_p7 = pnand %p1352_p2, %p1764_p12  ;;  %s241_s23 = int_to_ptr.vmem [resolvable:$true] %s240_s23 }
  0x4f   : > { %s230_s27 = scalar_lea.sflag [#allocation3], %s229_s8  ;;  %s1505_s28 = scalar_lea.hbm %s1789_s17, 128 }
  0x50   : > { %p1506_p9 = scmp.ne.s32.totalorder %s1789_s17, %s1505_s28  ;;  %p1507_p10 = pneg %p1793_p7 }
  0x51   : > { %s1510_s14 = scalar_lea.hbm %s1971_s0, 256  ;;  %p1511_p0 = scmp.lt.s32.totalorder %s1789_s17, %s1971_s0 }
  0x52   : > { %p1508_p11 = pnand %p1507_p10, %p1506_p9  ;;  %p1512_p12 = scmp.lt.s32.totalorder %s1510_s14, %s1505_s28 }
  0x54   : > { %p1509_p13 = pneg %p1508_p11  ;;  %p1513_p2 = por %p1512_p12, %p1511_p0 }
  0x56   : > { %p1514_p4 = pnand %p1513_p2, %p1509_p13 }
  0x58   : > { %1517 = shalt.err (!%p1514_p4)
}
  0x59   : > { %s1518_s10 = scalar_lea.vmem %s241_s23, 128  ;;  %s1613_s8 = smov [#allocation2]  }
  0x5a   : > { %p1519_p1 = scmp.ne.s32.totalorder %s241_s23, %s1518_s10  ;;  %s1523_s16 = sshll.u32 %s1613_s8, 4  ;;  %s1524_s16 = int_to_ptr.vmem [resolvable:$false] %s1523_s16 }
  0x5b   : > { %s1525_s22 = scalar_lea.vmem %s1524_s16, 256  ;;  %p1526_p9 = scmp.lt.s32.totalorder %s241_s23, %s1524_s16 }
  0x5c   : > { %p1521_p8 = pnand %p1519_p1, %p1507_p10  ;;  %p1527_p11 = scmp.lt.s32.totalorder %s1525_s22, %s1518_s10 }
  0x5e   : > { %p1522_p5 = pneg %p1521_p8  ;;  %p1528_p6 = por %p1527_p11, %p1526_p9 }
  0x60   : > { %p1529_p3 = pnand %p1528_p6, %p1522_p5 }
  0x62   : > { %1532 = shalt.err (!%p1529_p3)
}
  0x63   : > { %1343 = dma.hbm_to_vmem [thread:$0]  (!%p1793_p7), %s1789_s17, 128, %s241_s23, %s230_s27  }
  0x64   : > { %p1988_p13 = scmp.ne.s32.totalorder %s1981_s25, 0 }
  0x65   : > { %s1814_s28 = sand.u32 (!%p1988_p13), 1, %s1597_s19   ;;  %p1989_p1 = scmp.ne.s32.totalorder (!%p1988_p13), %s1984_s7, 0 }
  0x66   : > { %249 = sbr.rel (%p1988_p13) target bundleno = 582 (0x246), region = 40  ;;  %s1075_s30 = sshll.u32 (!%p1988_p13), %s1814_s28, 3 }
  0x67   : > { %s252_s6 = scalar_lea.sflag (!%p1988_p13), [#allocation3], %s1814_s28  ;;  %s1818_s14 = scalar_lea.vmem (!%p1988_p13), [#allocation2], %s1075_s30 }
  0x6b   : > { %1576 = dma.done.wait (%p1989_p1), %s252_s6, 128  }
  0x6c   : > { %1578 = vsyncadd (%p1989_p1), %s252_s6, 4294967168  ;;  %p1990_p3 = scmp.eq.s32.totalorder %s1671_s24, 0 }
  0x6e   : > { %1580 = dma.done.wait (%p1990_p3), [#allocation6], 4096   ;;  %p1991_p4 = pmov %p1990_p3 }
  0x6f   : > { %p1992_p6 = pmov %p1990_p3 }
  0x70   : > { %1582 = vsyncadd (%p1991_p4), [#allocation6], 4294963200 }
  0x71   : > { %1584 = dma.done.wait (%p1992_p6), [#allocation9], 4096   ;;  %p1993_p5 = pmov %p1990_p3 }
  0x72   : > { %v1614_v0 = vmov 0.0   ;;  %vm1615_vm0 = vmmov 0   ;;  %v315_v1 = vld [vmem:[#allocation5 + $0x78] sm:$0xff]  ;;  %v314_v3 = vld [vmem:[#allocation5 + $0x70] sm:$0xff]  ;;  %v313_v5 = vld [vmem:[#allocation5 + $0x68] sm:$0xff]  ;;  %s1080_s25 = sshll.u32 %s1814_s28, 5 }
  0x73   : > { %1586 = vsyncadd (%p1993_p5), [#allocation9], 4294963200  ;;  %1161 = vmatprep.subr.mxu0 %v1614_v0  ;;  %1196 = vmatprep.subr.mxu1 %v1614_v0  ;;  %v401_v2 = vld [vmem:[#allocation7 + $0x78] sm:$0xff]  ;;  %v400_v4 = vld [vmem:[#allocation7 + $0x70] sm:$0xff]  ;;  %s297_s7 = scalar_lea.vmem [#allocation11], %s1080_s25  ;;  %s1086_s23 = sshll.u32 %s1671_s24, 9 }
  0x74   : > { %1193 = vmatprep.mubr.msk.f32.mxu0 %vm1615_vm0, %v1614_v0  ;;  %1228 = vmatprep.mubr.msk.f32.mxu1 %vm1615_vm0, %v1614_v0  ;;  %v399_v6 = vld [vmem:[#allocation7 + $0x68] sm:$0xff]  ;;  %v312_v7 = vld [vmem:[#allocation5 + $0x60] sm:$0xff]  ;;  %v311_v9 = vld [vmem:[#allocation5 + $0x58] sm:$0xff]  ;;  %s954_s17 = sshll.u32 %s297_s7, 4  ;;  %s1928_s13 = scalar_lea.hbm %s1976_s5, %s1086_s23  ;;  %s1923_s17 = int_to_ptr.vmem [resolvable:$true] %s954_s17 }
  0x75   : > { %1162 = vmatpush3.msra.mxu0 %v315_v1  ;;  %1197 = vmatpush3.msra.mxu1 %v401_v2  ;;  %v398_v8 = vld [vmem:[#allocation7 + $0x60] sm:$0xff]  ;;  %v397_v10 = vld [vmem:[#allocation7 + $0x58] sm:$0xff]  ;;  %v310_v11 = vld [vmem:[#allocation5 + $0x50] sm:$0xff]  ;;  %v1616_v2 = vmov 1966171168   ;;  %s941_s15 = scalar_lea.sflag [#allocation4], %s1814_s28 }
  0x76   : > { %1163 = vmatprep.subr.mxu0 %v1614_v0  ;;  %1198 = vmatprep.subr.mxu1 %v1614_v0  ;;  %v396_v12 = vld [vmem:[#allocation7 + $0x50] sm:$0xff]  ;;  %v309_v13 = vld [vmem:[#allocation5 + $0x48] sm:$0xff]  ;;  %v308_v15 = vld [vmem:[#allocation5 + $0x40] sm:$0xff]  ;;  %s1533_s10 = scalar_lea.vmem %s1923_s17, 512  ;;  %p1994_p7 = scmp.ne.s32.totalorder %s1985_s11, 0 }
  0x77   : > { %1164 = vmatpush3.msra.mxu0 %v314_v3  ;;  %1199 = vmatpush3.msra.mxu1 %v400_v4  ;;  %v395_v14 = vld [vmem:[#allocation7 + $0x48] sm:$0xff]  ;;  %v394_v16 = vld [vmem:[#allocation7 + $0x40] sm:$0xff]  ;;  %v307_v17 = vld [vmem:[#allocation5 + $0x38] sm:$0xff]  ;;  %v475_v3 = vunpack.c.l.s4 %v1616_v2  ;;  %v477_v4 = vlaneseq  ;;  %p1534_p8 = scmp.ne.s32.totalorder %s1923_s17, %s1533_s10  ;;  %s1617_s24 = smov [#allocation11]  }
  0x78   : > { %1165 = vmatprep.subr.mxu0 %v1614_v0  ;;  %1200 = vmatprep.subr.mxu1 %v1614_v0  ;;  %v393_v18 = vld [vmem:[#allocation7 + $0x38] sm:$0xff]  ;;  %v306_v19 = vld [vmem:[#allocation5 + $0x30] sm:$0xff]  ;;  %v305_v21 = vld [vmem:[#allocation5 + $0x28] sm:$0xff]  ;;  %s1537_s8 = sshll.u32 %s1617_s24, 4  ;;  %s1538_s8 = int_to_ptr.vmem [resolvable:$false] %s1537_s8 }
  0x79   : > { %1166 = vmatpush3.msra.mxu0 %v313_v5  ;;  %1201 = vmatpush3.msra.mxu1 %v399_v6  ;;  %v392_v20 = vld [vmem:[#allocation7 + $0x30] sm:$0xff]  ;;  %v391_v22 = vld [vmem:[#allocation7 + $0x28] sm:$0xff]  ;;  %v304_v23 = vld [vmem:[#allocation5 + $0x20] sm:$0xff]  ;;  %v476_v5 = vunpack.c.0.s8 %v475_v3  ;;  %v478_v6 = vshrl.u32 %v477_v4, 7  ;;  %p1535_p10 = pnand %p1534_p8, %p1994_p7  ;;  %s1539_s16 = scalar_lea.vmem %s1538_s8, 1024 }
  0x7a   : > { %1167 = vmatprep.subr.mxu0 %v1614_v0  ;;  %1202 = vmatprep.subr.mxu1 %v1614_v0  ;;  %v390_v24 = vld [vmem:[#allocation7 + $0x20] sm:$0xff]  ;;  %v303_v25 = vld [vmem:[#allocation5 + $0x18] sm:$0xff]  ;;  %v302_v27 = vld [vmem:[#allocation5 + $0x10] sm:$0xff]  ;;  %p1540_p12 = scmp.lt.s32.totalorder %s1923_s17, %s1538_s8  ;;  %p1541_p2 = scmp.lt.s32.totalorder %s1539_s16, %s1533_s10 }
  0x7b   : > { %1168 = vmatpush3.msra.mxu0 %v312_v7  ;;  %1203 = vmatpush3.msra.mxu1 %v398_v8  ;;  %v389_v26 = vld [vmem:[#allocation7 + $0x18] sm:$0xff]  ;;  %v388_v28 = vld [vmem:[#allocation7 + $0x10] sm:$0xff]  ;;  %v301_v29 = vld [vmem:[#allocation5 + $0x8] sm:$0xff]  ;;  %v1867_v7 = vsub.s32 %v476_v5, %v478_v6  ;;  %p1536_p0 = pneg %p1535_p10 }
  0x7c   : > { %1169 = vmatprep.subr.mxu0 %v1614_v0  ;;  %1204 = vmatprep.subr.mxu1 %v1614_v0  ;;  %v387_v30 = vld [vmem:[#allocation7 + $0x8] sm:$0xff]  ;;  %v300_v31 = vld [vmem:[#allocation5] sm:$0xff]  ;;  %v299_v33 = vld [vmem:[%s1818_s14] sm:$0xff]  ;;  %p1542_p9 = por %p1541_p2, %p1540_p12 }
  0x7d   : > { %1170 = vmatpush3.msra.mxu0 %v311_v9  ;;  %1205 = vmatpush3.msra.mxu1 %v397_v10  ;;  %v386_v32 = vld [vmem:[#allocation7] sm:$0xff]  ;;  %v733_v34 = vld [vmem:[#allocation10 + $0x78] sm:$0xff]  ;;  %v732_v36 = vld [vmem:[#allocation10 + $0x70] sm:$0xff]  ;;  %v1869_v10 = vsub.s32 0, %v478_v6 }
  0x7e   : > { %1171 = vmatprep.subr.mxu0 %v1614_v0  ;;  %1206 = vmatprep.subr.mxu1 %v1614_v0  ;;  %v717_v35 = vld [vmem:[#allocation8 + $0x78] sm:$0xff]  ;;  %v716_v37 = vld [vmem:[#allocation8 + $0x70] sm:$0xff]  ;;  %v731_v38 = vld [vmem:[#allocation10 + $0x68] sm:$0xff]  ;;  %p1543_p11 = pnand %p1542_p9, %p1536_p0 }
  0x7f   : > { %1172 = vmatpush3.msra.mxu0 %v310_v11  ;;  %1207 = vmatpush3.msra.mxu1 %v396_v12  ;;  %v715_v39 = vld [vmem:[#allocation8 + $0x68] sm:$0xff]  ;;  %v730_v40 = vld [vmem:[#allocation10 + $0x60] sm:$0xff]  ;;  %v729_v42 = vld [vmem:[#allocation10 + $0x58] sm:$0xff] }
  0x80   : > { %1173 = vmatprep.subr.mxu0 %v1614_v0  ;;  %1208 = vmatprep.subr.mxu1 %v1614_v0  ;;  %v714_v41 = vld [vmem:[#allocation8 + $0x60] sm:$0xff]  ;;  %v713_v43 = vld [vmem:[#allocation8 + $0x58] sm:$0xff]  ;;  %v728_v44 = vld [vmem:[#allocation10 + $0x50] sm:$0xff] }
  0x81   : > { %1174 = vmatpush3.msra.mxu0 %v309_v13  ;;  %1209 = vmatpush3.msra.mxu1 %v395_v14  ;;  %v712_v45 = vld [vmem:[#allocation8 + $0x50] sm:$0xff]  ;;  %v727_v46 = vld [vmem:[#allocation10 + $0x48] sm:$0xff]  ;;  %v726_v48 = vld [vmem:[#allocation10 + $0x40] sm:$0xff] }
  0x82   : > { %1175 = vmatprep.subr.mxu0 %v1614_v0  ;;  %1210 = vmatprep.subr.mxu1 %v1614_v0  ;;  %v711_v47 = vld [vmem:[#allocation8 + $0x48] sm:$0xff]  ;;  %v710_v49 = vld [vmem:[#allocation8 + $0x40] sm:$0xff]  ;;  %v725_v50 = vld [vmem:[#allocation10 + $0x38] sm:$0xff] }
  0x83   : > { %1176 = vmatpush3.msra.mxu0 %v308_v15  ;;  %1211 = vmatpush3.msra.mxu1 %v394_v16  ;;  %v709_v51 = vld [vmem:[#allocation8 + $0x38] sm:$0xff]  ;;  %v724_v52 = vld [vmem:[#allocation10 + $0x30] sm:$0xff]  ;;  %v723_v54 = vld [vmem:[#allocation10 + $0x28] sm:$0xff] }
  0x84   : > { %1177 = vmatprep.subr.mxu0 %v1614_v0  ;;  %1212 = vmatprep.subr.mxu1 %v1614_v0  ;;  %v708_v53 = vld [vmem:[#allocation8 + $0x30] sm:$0xff]  ;;  %v707_v55 = vld [vmem:[#allocation8 + $0x28] sm:$0xff]  ;;  %v722_v56 = vld [vmem:[#allocation10 + $0x20] sm:$0xff] }
  0x85   : > { %1178 = vmatpush3.msra.mxu0 %v307_v17  ;;  %1213 = vmatpush3.msra.mxu1 %v393_v18  ;;  %v706_v57 = vld [vmem:[#allocation8 + $0x20] sm:$0xff]  ;;  %v721_v58 = vld [vmem:[#allocation10 + $0x18] sm:$0xff]  ;;  %v720_v60 = vld [vmem:[#allocation10 + $0x10] sm:$0xff] }
  0x86   : > { %1179 = vmatprep.subr.mxu0 %v1614_v0  ;;  %1214 = vmatprep.subr.mxu1 %v1614_v0  ;;  %v705_v59 = vld [vmem:[#allocation8 + $0x18] sm:$0xff]  ;;  %v704_v61 = vld [vmem:[#allocation8 + $0x10] sm:$0xff]  ;;  %v719_v62 = vld [vmem:[#allocation10 + $0x8] sm:$0xff] }
  0x87   : > { %1180 = vmatpush3.msra.mxu0 %v306_v19  ;;  %1215 = vmatpush3.msra.mxu1 %v392_v20  ;;  %v703_v63 = vld [vmem:[#allocation8 + $0x8] sm:$0xff]  ;;  %v702_v1 = vld [vmem:[#allocation8] sm:$0xff] }
  0x88   : > { %1181 = vmatprep.subr.mxu0 %v1614_v0  ;;  %1216 = vmatprep.subr.mxu1 %v1614_v0 }
  0x89   : > { %1182 = vmatpush3.msra.mxu0 %v305_v21  ;;  %1217 = vmatpush3.msra.mxu1 %v391_v22 }
  0x8a   : > { %1183 = vmatprep.subr.mxu0 %v1614_v0  ;;  %1218 = vmatprep.subr.mxu1 %v1614_v0 }
  0x8b   : > { %1184 = vmatpush3.msra.mxu0 %v304_v23  ;;  %1219 = vmatpush3.msra.mxu1 %v390_v24 }
  0x8c   : > { %1185 = vmatprep.subr.mxu0 %v1614_v0  ;;  %1220 = vmatprep.subr.mxu1 %v1614_v0 }
  0x8d   : > { %1186 = vmatpush3.msra.mxu0 %v303_v25  ;;  %1221 = vmatpush3.msra.mxu1 %v389_v26 }
  0x8e   : > { %1187 = vmatprep.subr.mxu0 %v1614_v0  ;;  %1222 = vmatprep.subr.mxu1 %v1614_v0 }
  0x8f   : > { %1188 = vmatpush3.msra.mxu0 %v302_v27  ;;  %1223 = vmatpush3.msra.mxu1 %v388_v28 }
  0x90   : > { %1189 = vmatprep.subr.mxu0 %v1614_v0  ;;  %1224 = vmatprep.subr.mxu1 %v1614_v0 }
  0x91   : > { %1190 = vmatpush3.msra.mxu0 %v301_v29  ;;  %1225 = vmatpush3.msra.mxu1 %v387_v30 }
  0x92   : > { %1191 = vmatprep.subr.mxu0 %v1614_v0  ;;  %1226 = vmatprep.subr.mxu1 %v1614_v0  ;;  %v718_v0 = vld [vmem:[#allocation10] sm:$0xff] }
  0x93   : > { %1192 = vmatpush3.msra.mxu0 %v300_v31  ;;  %1227 = vmatpush3.msra.mxu1 %v386_v32 }
  0x94   : > { %1194 = vmatmul.mubr.f32.vlgmr.msra.gmra.mxu0 %v299_v33  ;;  %1229 = vmatmul.mubr.f32.vlgmr.msra.gmra.mxu1 %v299_v33 }
  0x95   : > { %1231 = vmatprep.subr.mxu0 %v733_v34  ;;  %1269 = vmatprep.subr.mxu1 %v717_v35 }
  0x96   : > { %1232 = vmatpush3.msra.mxu0 %v733_v34  ;;  %1270 = vmatpush3.msra.mxu1 %v717_v35 }
  0x97   : > { %1233 = vmatprep.subr.mxu0 %v732_v36  ;;  %1271 = vmatprep.subr.mxu1 %v716_v37 }
  0x98   : > { %1234 = vmatpush3.msra.mxu0 %v732_v36  ;;  %1272 = vmatpush3.msra.mxu1 %v716_v37 }
  0x99   : > { %1235 = vmatprep.subr.mxu0 %v731_v38  ;;  %1273 = vmatprep.subr.mxu1 %v715_v39 }
  0x9a   : > { %1236 = vmatpush3.msra.mxu0 %v731_v38  ;;  %1274 = vmatpush3.msra.mxu1 %v715_v39 }
  0x9b   : > { %1237 = vmatprep.subr.mxu0 %v730_v40  ;;  %1275 = vmatprep.subr.mxu1 %v714_v41 }
  0x9c   : > { %1238 = vmatpush3.msra.mxu0 %v730_v40  ;;  %1276 = vmatpush3.msra.mxu1 %v714_v41 }
  0x9d   : > { %1239 = vmatprep.subr.mxu0 %v729_v42  ;;  %1277 = vmatprep.subr.mxu1 %v713_v43 }
  0x9e   : > { %1240 = vmatpush3.msra.mxu0 %v729_v42  ;;  %1278 = vmatpush3.msra.mxu1 %v713_v43 }
  0x9f   : > { %1241 = vmatprep.subr.mxu0 %v728_v44  ;;  %1279 = vmatprep.subr.mxu1 %v712_v45 }
  0xa0   : > { %1242 = vmatpush3.msra.mxu0 %v728_v44  ;;  %1280 = vmatpush3.msra.mxu1 %v712_v45 }
  0xa1   : > { %1243 = vmatprep.subr.mxu0 %v727_v46  ;;  %1281 = vmatprep.subr.mxu1 %v711_v47 }
  0xa2   : > { %1244 = vmatpush3.msra.mxu0 %v727_v46  ;;  %1282 = vmatpush3.msra.mxu1 %v711_v47 }
  0xa3   : > { %1245 = vmatprep.subr.mxu0 %v726_v48  ;;  %1283 = vmatprep.subr.mxu1 %v710_v49 }
  0xa4   : > { %1246 = vmatpush3.msra.mxu0 %v726_v48  ;;  %1284 = vmatpush3.msra.mxu1 %v710_v49 }
  0xa5   : > { %1247 = vmatprep.subr.mxu0 %v725_v50  ;;  %1285 = vmatprep.subr.mxu1 %v709_v51 }
  0xa6   : > { %1248 = vmatpush3.msra.mxu0 %v725_v50  ;;  %1286 = vmatpush3.msra.mxu1 %v709_v51 }
  0xa7   : > { %1249 = vmatprep.subr.mxu0 %v724_v52  ;;  %1287 = vmatprep.subr.mxu1 %v708_v53 }
  0xa8   : > { %1250 = vmatpush3.msra.mxu0 %v724_v52  ;;  %1288 = vmatpush3.msra.mxu1 %v708_v53 }
  0xa9   : > { %1251 = vmatprep.subr.mxu0 %v723_v54  ;;  %1289 = vmatprep.subr.mxu1 %v707_v55 }
  0xaa   : > { %1252 = vmatpush3.msra.mxu0 %v723_v54  ;;  %1290 = vmatpush3.msra.mxu1 %v707_v55 }
  0xab   : > { %1253 = vmatprep.subr.mxu0 %v722_v56  ;;  %1291 = vmatprep.subr.mxu1 %v706_v57 }
  0xac   : > { %1254 = vmatpush3.msra.mxu0 %v722_v56  ;;  %1292 = vmatpush3.msra.mxu1 %v706_v57 }
  0xad   : > { %1255 = vmatprep.subr.mxu0 %v721_v58  ;;  %1293 = vmatprep.subr.mxu1 %v705_v59 }
  0xae   : > { %1256 = vmatpush3.msra.mxu0 %v721_v58  ;;  %1294 = vmatpush3.msra.mxu1 %v705_v59 }
  0xaf   : > { %1257 = vmatprep.subr.mxu0 %v720_v60  ;;  %1295 = vmatprep.subr.mxu1 %v704_v61 }
  0xb0   : > { %1258 = vmatpush3.msra.mxu0 %v720_v60  ;;  %1296 = vmatpush3.msra.mxu1 %v704_v61 }
  0xb1   : > { %1259 = vmatprep.subr.mxu0 %v719_v62  ;;  %1297 = vmatprep.subr.mxu1 %v703_v63 }
  0xb2   : > { %1260 = vmatpush3.msra.mxu0 %v719_v62  ;;  %1298 = vmatpush3.msra.mxu1 %v703_v63 }
  0xb3   : > { %1261 = vmatprep.subr.mxu0 %v718_v0  ;;  %1299 = vmatprep.subr.mxu1 %v702_v1 }
  0xb4   : > { %1262 = vmatpush3.msra.mxu0 %v718_v0  ;;  %1300 = vmatpush3.msra.mxu1 %v702_v1 }
 0x154   : > { %v382_v8 = vpop.f32.mrf.mxu0  ;;  %v468_v9 = vpop.f32.mrf.mxu1 }
 0x155   : > { %v1871_v11 = vcombine.high %v382_v8, %v382_v8  ;;  %v1873_v12 = vcombine.high %v468_v9, %v468_v9  ;;  %v480_v13 = vrot.slane %v382_v8, %v1867_v7  ;;  %v570_v14 = vrot.slane %v468_v9, %v1867_v7 }
 0x156   : > { %v1195_v15 = vpop.f32.mrf.mxu0  ;;  %v1230_v16 = vpop.f32.mrf.mxu1 }
 0x157   : > { %v488_v17 = vcombine.high %v480_v13, %v480_v13  ;;  %v496_v18 = vrot.slane %v480_v13, %v1867_v7  ;;  %v578_v19 = vcombine.high %v570_v14, %v570_v14  ;;  %v586_v20 = vrot.slane %v570_v14, %v1867_v7 }
 0x158   : > { %v487_v21 = vrot.slane %v1871_v11, %v1867_v7  ;;  %v577_v22 = vrot.slane %v1873_v12, %v1867_v7 }
 0x159   : > { %v510_v23 = vrot.slane %v488_v17, %v1867_v7  ;;  %v518_v24 = vcombine.high %v496_v18, %v496_v18  ;;  %v525_v25 = vrot.slane %v496_v18, %v1869_v10  ;;  %v600_v26 = vrot.slane %v578_v19, %v1867_v7 }
 0x15a   : > { %v608_v27 = vcombine.high %v586_v20, %v586_v20  ;;  %v615_v28 = vrot.slane %v586_v20, %v1869_v10  ;;  %v489_v29 = vcombine.high %v487_v21, %v487_v21  ;;  %v503_v30 = vrot.slane %v487_v21, %v1867_v7 }
 0x15b   : > { %v520_v31 = vcombine.high %v510_v23, %v510_v23  ;;  %v529_v32 = vrot.slane %v510_v23, %v1869_v10  ;;  %v610_v33 = vcombine.high %v600_v26, %v600_v26  ;;  %v619_v34 = vrot.slane %v600_v26, %v1869_v10 }
 0x15c   : > { %v678_v35 = vmul.f32 %v615_v28, %v382_v8  ;;  %v686_v36 = vmul.f32 %v525_v25, %v468_v9  ;;  %v654_v37 = vmul.f32 %v525_v25, %v382_v8  ;;  %v662_v38 = vmul.f32 %v615_v28, %v468_v9 }
 0x15d   : > { %v679_v39 = vmul.f32 %v619_v34, %v382_v8  ;;  %v687_v40 = vmul.f32 %v529_v32, %v468_v9  ;;  %v655_v41 = vmul.f32 %v529_v32, %v382_v8  ;;  %v663_v42 = vmul.f32 %v619_v34, %v468_v9 }
 0x15e   : > { %v694_v43 = vsub.f32 %v678_v35, %v686_v36  ;;  %v670_v44 = vadd.f32 %v662_v38, %v654_v37  ;;  %v533_v45 = vrot.slane %v518_v24, %v1869_v10  ;;  %v537_v46 = vrot.slane %v520_v31, %v1869_v10 }
 0x15f   : > { %v695_v47 = vsub.f32 %v679_v39, %v687_v40  ;;  %v671_v48 = vadd.f32 %v663_v42, %v655_v41  ;;  %v623_v49 = vrot.slane %v608_v27, %v1869_v10  ;;  %v627_v50 = vrot.slane %v610_v33, %v1869_v10 }
 0x160   : > { %v688_v51 = vmul.f32 %v533_v45, %v468_v9  ;;  %v689_v52 = vmul.f32 %v537_v46, %v468_v9  ;;  %v656_v53 = vmul.f32 %v533_v45, %v382_v8  ;;  %v657_v54 = vmul.f32 %v537_v46, %v382_v8 }
 0x161   : > { %v742_v55 = vcombine.low %v694_v43, %v695_v47  ;;  %v843_v56 = vcombine.low %v670_v44, %v671_v48  ;;  %v680_v57 = vmul.f32 %v623_v49, %v382_v8  ;;  %v681_v58 = vmul.f32 %v627_v50, %v382_v8 }
 0x162   : > { %v664_v59 = vmul.f32 %v623_v49, %v468_v9  ;;  %v665_v60 = vmul.f32 %v627_v50, %v468_v9  ;;  %v517_v61 = vrot.slane %v489_v29, %v1867_v7  ;;  %v541_v62 = vrot.slane %v503_v30, %v1869_v10 }
 0x163   : > { %1263 = vmatprep.mubr.f32.mxu0 %v742_v55  ;;  %1301 = vmatprep.mubr.f32.mxu1 %v843_v56  ;;  %v696_v63 = vsub.f32 %v680_v57, %v688_v51  ;;  %v697_v0 = vsub.f32 %v681_v58, %v689_v52  ;;  %v579_v1 = vcombine.high %v577_v22, %v577_v22 }
 0x164   : > { %v672_v2 = vadd.f32 %v664_v59, %v656_v53  ;;  %v673_v3 = vadd.f32 %v665_v60, %v657_v54  ;;  %v545_v4 = vrot.slane %v517_v61, %v1869_v10  ;;  %v593_v5 = vrot.slane %v577_v22, %v1867_v7 }
 0x165   : > { %v743_v6 = vcombine.low %v696_v63, %v697_v0  ;;  %v607_v8 = vrot.slane %v579_v1, %v1867_v7  ;;  %v690_v9 = vmul.f32 %v1873_v12, %v541_v62  ;;  %v658_v13 = vmul.f32 %v541_v62, %v1871_v11 }
 0x166   : > { %v844_v14 = vcombine.low %v672_v2, %v673_v3  ;;  %v631_v15 = vrot.slane %v593_v5, %v1869_v10  ;;  %v691_v16 = vmul.f32 %v1873_v12, %v545_v4  ;;  %v659_v17 = vmul.f32 %v545_v4, %v1871_v11 }
 0x167   : > { %1264 = vmatmul.mubr.f32.vlgmr.msra.gmra.mxu0 %v743_v6  ;;  %v635_v18 = vrot.slane %v607_v8, %v1869_v10  ;;  %v519_v19 = vcombine.high %v503_v30, %v503_v30  ;;  %v521_v20 = vcombine.high %v517_v61, %v517_v61  ;;  %v609_v21 = vcombine.high %v593_v5, %v593_v5 }
 0x168   : > { %1302 = vmatmul.mubr.f32.vlgmr.msra.gmra.mxu1 %v844_v14  ;;  %v682_v7 = vmul.f32 %v631_v15, %v1871_v11  ;;  %v666_v22 = vmul.f32 %v631_v15, %v1873_v12  ;;  %v611_v23 = vcombine.high %v607_v8, %v607_v8 }
 0x169   : > { %v683_v24 = vmul.f32 %v635_v18, %v1871_v11  ;;  %v667_v25 = vmul.f32 %v635_v18, %v1873_v12  ;;  %v549_v26 = vrot.slane %v519_v19, %v1869_v10  ;;  %v553_v27 = vrot.slane %v521_v20, %v1869_v10 }
 0x16a   : > { %v698_v28 = vsub.f32 %v682_v7, %v690_v9  ;;  %v674_v29 = vadd.f32 %v666_v22, %v658_v13  ;;  %v639_v30 = vrot.slane %v609_v21, %v1869_v10  ;;  %v643_v31 = vrot.slane %v611_v23, %v1869_v10 }
 0x16b   : > { %v699_v32 = vsub.f32 %v683_v24, %v691_v16  ;;  %v675_v33 = vadd.f32 %v667_v25, %v659_v17  ;;  %v692_v34 = vmul.f32 %v1873_v12, %v549_v26  ;;  %v693_v35 = vmul.f32 %v1873_v12, %v553_v27 }
 0x16c   : > { %v684_v36 = vmul.f32 %v639_v30, %v1871_v11  ;;  %v685_v37 = vmul.f32 %v643_v31, %v1871_v11  ;;  %v660_v38 = vmul.f32 %v549_v26, %v1871_v11  ;;  %v661_v39 = vmul.f32 %v553_v27, %v1871_v11 }
 0x16d   : > { %v744_v40 = vcombine.low %v698_v28, %v699_v32  ;;  %v845_v41 = vcombine.low %v674_v29, %v675_v33  ;;  %v668_v42 = vmul.f32 %v639_v30, %v1873_v12  ;;  %v669_v10 = vmul.f32 %v643_v31, %v1873_v12 }
 0x16e   : > { %v700_v43 = vsub.f32 %v684_v36, %v692_v34  ;;  %v701_v44 = vsub.f32 %v685_v37, %v693_v35 }
 0x16f   : > { %1266 = vmatprep.mubr.f32.mxu0 %v744_v40  ;;  %1304 = vmatprep.mubr.f32.mxu1 %v845_v41  ;;  %v676_v45 = vadd.f32 %v668_v42, %v660_v38  ;;  %v677_v46 = vadd.f32 %v669_v10, %v661_v39 }
 0x170   : > { %v745_v47 = vcombine.low %v700_v43, %v701_v44 }
 0x171   : > { %v846_v48 = vcombine.low %v676_v45, %v677_v46 }
 0x172   : > { %1267 = vmatmul.mubr.f32.gmra.mxu0 %v745_v47 }
 0x173   : > { %1305 = vmatmul.mubr.f32.gmra.mxu1 %v846_v48 }
 0x227   : > { %v1265_v49 = vpop.f32.mrf.mxu0 }
 0x228   : > { %v1303_v11 = vpop.f32.mrf.mxu1 }
 0x229   : > { %v923_v50 = vadd.f32 %v1303_v11, %v1265_v49  ;;  %v816_v51 = vpop.f32.mrf.mxu0 }
 0x22a   : > { %v917_v52 = vpop.f32.mrf.mxu1 }
 0x22b   : > { %937 = vst [vmem:[%s297_s7 + $0x8] sm:$0xff] %v923_v50  ;;  %v918_v12 = vadd.f32 %v917_v52, %v816_v51 }
 0x22d   : > { %936 = vst [vmem:[%s297_s7] sm:$0xff] %v918_v12 }
 0x232   : > { %v1268_v53 = vpop.f32.mrf.mxu0 }
 0x233   : > { %v1306_v54 = vpop.f32.mrf.mxu1 }
 0x234   : > { %v933_v55 = vadd.f32 %v1306_v54, %v1268_v53  ;;  %v826_v56 = vpop.f32.mrf.mxu0 }
 0x235   : > { %v927_v57 = vpop.f32.mrf.mxu1 }
 0x236   : > { %939 = vst [vmem:[%s297_s7 + $0x18] sm:$0xff] %v933_v55  ;;  %v928_v58 = vadd.f32 %v927_v57, %v826_v56 }
 0x238   : > { %938 = vst [vmem:[%s297_s7 + $0x10] sm:$0xff] %v928_v58 }
 0x239   : > { %1546 = shalt.err (!%p1543_p11)
}
 0x23a   : > { %s1547_s22 = scalar_lea.hbm %s1928_s13, 512  ;;  %s1551_s14 = scalar_lea.hbm %s1976_s5, 1024 }
 0x23b   : > { %p1548_p13 = scmp.ne.s32.totalorder %s1928_s13, %s1547_s22  ;;  %p1552_p4 = scmp.lt.s32.totalorder %s1928_s13, %s1976_s5 }
 0x23c   : > { %p1553_p6 = scmp.lt.s32.totalorder %s1551_s14, %s1547_s22 }
 0x23d   : > { %p1549_p1 = pnand %p1548_p13, %p1994_p7 }
 0x23e   : > { %p1554_p5 = por %p1553_p6, %p1552_p4 }
 0x23f   : > { %p1550_p3 = pneg %p1549_p1 }
 0x241   : > { %p1555_p8 = pnand %p1554_p5, %p1550_p3 }
 0x243   : > { %1558 = shalt.err (!%p1555_p8)
}
 0x244   : > { %s1618_s23 = smov 128   ;;  %s1619_s26 = smov 8  }
 0x245   : > { %1325 = dma.vmem_to_hbm [thread:$0]  (%p1994_p7), %s1923_s17, 512, %s1928_s13, %s941_s15, %s1618_s23, %s1618_s23, %s1619_s26  }
 0x246 PF: > { %s969_s27 = sand.u32 1, %s1593_s18   ;;  %p1995_p10 = scmp.ne.s32.totalorder %s1986_s12, 0 }
 0x247   : > { %p1996_p0 = scmp.ge.s32.totalorder %s1605_s21, 2  ;;  %s970_s10 = scalar_lea.sflag [#allocation4], %s969_s27 }
 0x249   : > { %p1345_p12 = pnand %p1996_p0, %p1995_p10 }
 0x24b   : > { %p1346_p2 = pneg %p1345_p12 }
 0x24d   : > { %1588 = dma.done.wait (%p1346_p2), %s970_s10, 512  }
 0x24e   : > { %1590 = vsyncadd (%p1346_p2), %s970_s10, 4294966784  ;;  %p20_p9 = scmp.ge.s32.totalorder %s1751_s29, 4   ;;  %s1997_s18 = smov %s1597_s19 }
 0x24f   : > { %s1998_s19 = smov %s1601_s20  ;;  %s1999_s20 = smov %s1762_s9 }
 0x250   : > { %s2000_s21 = smov %s1751_s29  ;;  %22 = sbr.rel (!%p20_p9) target bundleno = 7 (0x7), region = 101 }
 0x255   :  { %975 = vsyncpa [#allocation3], 1 }
 0x256   :  { %977 = vsyncpa [#allocation3 + $0x1], 1 }
 0x257   :  { %978 = vsyncpa [#allocation6], 1 }
 0x258   :  { %979 = vsyncpa [#allocation9], 1 }
 0x259   :  { %980 = vsyncpa [#allocation4], 1 }
 0x25a   :  { %982 = vsyncpa [#allocation4 + $0x1], 1 }

</bundles_post_ra>
